<compile_context>
chip_gen: v6e
topology: v6e:2x2x1
jax: 0.10.0
libtpu: 0.0.40
codegen_flags: <defaults>
</compile_context>

<pallas_src>
import jax
import jax.numpy as jnp
from jax.experimental import pallas as pl
from jax.experimental.pallas import tpu as pltpu

HIDDEN_DIM = 32
INPUT_DIM = 1
NUM_LAYERS = 2
OUTPUT_DIM = 1


def lstm_kernel(x_ref, w0_ref, w1_ref, fc_ref, out_ref):
    # x_ref : (T, B, 1)      raw input, time-major
    # w0_ref: (H+2, 4H)      rows [0:H]=Wh0, row H=Wi0 (input_dim==1), row H+1=b0
    #                        (gate order i,f,o,g)
    # w1_ref: (2H+1, 4H)     rows [0:2H]=[Wi1; Wh1] fused, row 2H=b1  (i,f,o,g)
    # fc_ref: (H+1, OUT)     rows [0:H]=Wfc, row H=bfc
    # out_ref: (B, OUT)
    T, B, _ = x_ref.shape
    H = w0_ref.shape[1] // 4

    # Load all weights/biases once before the recurrence (stay in vregs).
    wh0 = w0_ref[0:H, :]                 # (H, 4H)   tile-aligned slice
    wi0 = w0_ref[H:H + 1, :]             # (1, 4H)
    b0 = w0_ref[H + 1:H + 2, :]          # (1, 4H)
    w1 = w1_ref[0:2 * H, :]              # (2H, 4H)  tile-aligned slice
    b1 = w1_ref[2 * H:2 * H + 1, :]      # (1, 4H)

    def step(t, carry):
        h0, c0, h1, c1 = carry

        # ----- layer 0 -----
        x_t = x_ref[t]                                         # (B, 1)
        gates0 = (x_t * wi0 + b0                               # VPU (off crit path)
                  + jnp.dot(h0, wh0, preferred_element_type=jnp.float32))
        sig0 = jax.nn.sigmoid(gates0[:, :3 * H])               # i|f|o in one EUP pass
        g0 = jnp.tanh(gates0[:, 3 * H:])
        i0 = sig0[:, 0 * H:1 * H]
        f0 = sig0[:, 1 * H:2 * H]
        o0 = sig0[:, 2 * H:3 * H]
        c0n = f0 * c0 + i0 * g0
        h0n = o0 * jnp.tanh(c0n)

        # ----- layer 1 (fused input+hidden matmul) -----
        hcat = jnp.concatenate([h0n, h1], axis=1)              # (B, 2H)
        gates1 = jnp.dot(hcat, w1, preferred_element_type=jnp.float32) + b1
        sig1 = jax.nn.sigmoid(gates1[:, :3 * H])
        g1 = jnp.tanh(gates1[:, 3 * H:])
        i1 = sig1[:, 0 * H:1 * H]
        f1 = sig1[:, 1 * H:2 * H]
        o1 = sig1[:, 2 * H:3 * H]
        c1n = f1 * c1 + i1 * g1
        h1n = o1 * jnp.tanh(c1n)

        return (h0n, c0n, h1n, c1n)

    zeros = jnp.zeros((B, H), jnp.float32)
    _, _, h1, _ = jax.lax.fori_loop(
        0, T, step, (zeros, zeros, zeros, zeros), unroll=True)

    # fc on the last timestep's top-layer hidden state (fused into the kernel).
    out_ref[...] = (jnp.dot(h1, fc_ref[0:H, :],
                            preferred_element_type=jnp.float32)
                    + fc_ref[H:H + 1, :])


def _reorder_gates(w):
    """Reorder torch gate layout (i,f,g,o) -> kernel layout (i,f,o,g) on last dim."""
    H = HIDDEN_DIM
    return jnp.concatenate(
        [w[..., 0 * H:1 * H], w[..., 1 * H:2 * H],
         w[..., 3 * H:4 * H], w[..., 2 * H:3 * H]], axis=-1)


def lstm_forward(x, params):
    """x: (B, T, INPUT_DIM) float32, batch-first like PyTorch."""
    wi0, wh0, b0, wi1, wh1, b1, wfc, bfc = params
    B, T, Din = x.shape
    assert Din == INPUT_DIM

    # Gate-reorder torch -> kernel layout (tiny weight-only preprocessing).
    wi0_r, wh0_r, b0_r = (_reorder_gates(w) for w in (wi0, wh0, b0))
    wi1_r, wh1_r, b1_r = (_reorder_gates(w) for w in (wi1, wh1, b1))

    # Pack each layer's weights + bias into one lane-dense operand.
    w0_pack = jnp.concatenate([wh0_r, wi0_r, b0_r], axis=0)     # (H+2, 4H)
    w1_pack = jnp.concatenate([wi1_r, wh1_r, b1_r], axis=0)     # (2H+1, 4H)
    fc_pack = jnp.concatenate([wfc, bfc], axis=0)               # (H+1, OUT)

    x_tm = jnp.transpose(x, (1, 0, 2)).astype(jnp.float32)      # (T, B, 1)

    vmem = pl.BlockSpec(memory_space=pltpu.MemorySpace.VMEM)
    out = pl.pallas_call(
        lstm_kernel,
        out_shape=jax.ShapeDtypeStruct((B, OUTPUT_DIM), jnp.float32),
        in_specs=[vmem, vmem, vmem, vmem],
        out_specs=vmem,
    )(x_tm, w0_pack, w1_pack, fc_pack)
    return out


def lstm_ref(x, params):
    """Pure-JAX reference mirroring torch.nn.LSTM(batch_first=True) + Linear."""
    wi0, wh0, b0, wi1, wh1, b1, wfc, bfc = params
    B, T, _ = x.shape
    H = HIDDEN_DIM
    h0 = jnp.zeros((B, H), jnp.float32)
    c0 = jnp.zeros((B, H), jnp.float32)
    h1 = jnp.zeros((B, H), jnp.float32)
    c1 = jnp.zeros((B, H), jnp.float32)
    for t in range(T):
        x_t = x[:, t, :]
        g0 = x_t @ wi0 + h0 @ wh0 + b0
        i0 = jax.nn.sigmoid(g0[:, 0 * H:1 * H])
        f0 = jax.nn.sigmoid(g0[:, 1 * H:2 * H])
        gg0 = jnp.tanh(g0[:, 2 * H:3 * H])
        o0 = jax.nn.sigmoid(g0[:, 3 * H:4 * H])
        c0 = f0 * c0 + i0 * gg0
        h0 = o0 * jnp.tanh(c0)
        g1 = h0 @ wi1 + h1 @ wh1 + b1
        i1 = jax.nn.sigmoid(g1[:, 0 * H:1 * H])
        f1 = jax.nn.sigmoid(g1[:, 1 * H:2 * H])
        gg1 = jnp.tanh(g1[:, 2 * H:3 * H])
        o1 = jax.nn.sigmoid(g1[:, 3 * H:4 * H])
        c1 = f1 * c1 + i1 * gg1
        h1 = o1 * jnp.tanh(c1)
    return h1 @ wfc + bfc


def init_params(key):
    """Deterministic init matching nn.LSTM / nn.Linear shapes (U(-k, k), k=1/sqrt(H)).
    Stored pre-transposed (in_features, 4H) in torch gate order (i,f,g,o)."""
    H = HIDDEN_DIM
    k = 1.0 / jnp.sqrt(jnp.float32(H))
    ks = jax.random.split(key, 10)

    def u(kk, shape):
        return jax.random.uniform(kk, shape, jnp.float32, minval=-k, maxval=k)

    wi0 = u(ks[0], (INPUT_DIM, 4 * H))
    wh0 = u(ks[1], (H, 4 * H))
    b0 = u(ks[2], (1, 4 * H)) + u(ks[3], (1, 4 * H))   # b_ih + b_hh
    wi1 = u(ks[4], (H, 4 * H))
    wh1 = u(ks[5], (H, 4 * H))
    b1 = u(ks[6], (1, 4 * H)) + u(ks[7], (1, 4 * H))
    wfc = u(ks[8], (H, OUTPUT_DIM))
    bfc = u(ks[9], (1, OUTPUT_DIM))
    return (wi0, wh0, b0, wi1, wh1, b1, wfc, bfc)


if __name__ == "__main__":
    B, T = 2, 8
    key = jax.random.PRNGKey(0)
    kx, kp = jax.random.split(key)
    x = jax.random.normal(kx, (B, T, INPUT_DIM), jnp.float32)
    params = init_params(kp)

    out = lstm_forward(x, params)
    out = jax.block_until_ready(out)

    ref = lstm_ref(x, params)
    assert out.shape == (B, OUTPUT_DIM)
    assert jnp.allclose(out, ref, atol=1e-5, rtol=1e-5), (out, ref)
    print("KERNEL_OK")
</pallas_src>

<mosaic_0001>
module attributes {stable_mosaic.version = 11 : i64} {
  func.func @lstm_kernel(%arg0: memref<8x2x1xf32, #tpu.memory_space<vmem>>, %arg1: memref<34x128xf32, #tpu.memory_space<vmem>>, %arg2: memref<65x128xf32, #tpu.memory_space<vmem>>, %arg3: memref<33x1xf32, #tpu.memory_space<vmem>>, %arg4: memref<2x1xf32, #tpu.memory_space<vmem>>) attributes {dimension_semantics = [], scalar_prefetch = 0 : i64, scratch_operands = 0 : i64, tpu.core_type = #tpu.core_type<tc>} {
    %c0 = arith.constant 0 : index
    %c0_0 = arith.constant 0 : index
    %0 = vector.load %arg1[%c0, %c0_0] : memref<34x128xf32, #tpu.memory_space<vmem>>, vector<32x128xf32>
    %c32 = arith.constant 32 : index
    %c0_1 = arith.constant 0 : index
    %1 = vector.load %arg1[%c32, %c0_1] : memref<34x128xf32, #tpu.memory_space<vmem>>, vector<1x128xf32>
    %c33 = arith.constant 33 : index
    %c0_2 = arith.constant 0 : index
    %2 = vector.load %arg1[%c33, %c0_2] : memref<34x128xf32, #tpu.memory_space<vmem>>, vector<1x128xf32>
    %c0_3 = arith.constant 0 : index
    %c0_4 = arith.constant 0 : index
    %3 = vector.load %arg2[%c0_3, %c0_4] : memref<65x128xf32, #tpu.memory_space<vmem>>, vector<64x128xf32>
    %c64 = arith.constant 64 : index
    %c0_5 = arith.constant 0 : index
    %4 = vector.load %arg2[%c64, %c0_5] : memref<65x128xf32, #tpu.memory_space<vmem>>, vector<1x128xf32>
    %cst = arith.constant 0.000000e+00 : f32
    %5 = vector.broadcast %cst : f32 to vector<2x32xf32>
    %c0_i32 = arith.constant 0 : i32
    %6 = arith.index_cast %c0_i32 : i32 to index
    %c0_6 = arith.constant 0 : index
    %c0_7 = arith.constant 0 : index
    %7 = vector.load %arg0[%6, %c0_6, %c0_7] : memref<8x2x1xf32, #tpu.memory_space<vmem>>, vector<1x2x1xf32>
    %8 = vector.shape_cast %7 : vector<1x2x1xf32> to vector<2x1xf32>
    %9 = vector.broadcast %8 : vector<2x1xf32> to vector<2x128xf32>
    %10 = vector.broadcast %1 : vector<1x128xf32> to vector<2x128xf32>
    %11 = arith.mulf %9, %10 : vector<2x128xf32>
    %12 = vector.broadcast %2 : vector<1x128xf32> to vector<2x128xf32>
    %13 = arith.addf %11, %12 : vector<2x128xf32>
    %cst_8 = arith.constant dense<0.000000e+00> : vector<2x128xf32>
    %14 = tpu.matmul %5, %0, %cst_8 {dimension_numbers = #tpu.dot_dimension_numbers<[1], [0], [0], [1], [0, 0, 1, 1], [], []>} : vector<2x32xf32>, vector<32x128xf32>, vector<2x128xf32> -> vector<2x128xf32>
    %15 = arith.addf %13, %14 : vector<2x128xf32>
    %16 = vector.extract_strided_slice %15 {offsets = [0, 0], sizes = [2, 96], strides = [1, 1]} : vector<2x128xf32> to vector<2x96xf32>
    %17 = arith.negf %16 : vector<2x96xf32>
    %18 = math.exp %17 : vector<2x96xf32>
    %cst_9 = arith.constant 1.000000e+00 : f32
    %19 = vector.broadcast %cst_9 : f32 to vector<2x96xf32>
    %20 = arith.addf %19, %18 : vector<2x96xf32>
    %21 = arith.divf %19, %20 : vector<2x96xf32>
    %22 = vector.extract_strided_slice %15 {offsets = [0, 96], sizes = [2, 32], strides = [1, 1]} : vector<2x128xf32> to vector<2x32xf32>
    %23 = math.tanh %22 : vector<2x32xf32>
    %24 = vector.extract_strided_slice %21 {offsets = [0, 0], sizes = [2, 32], strides = [1, 1]} : vector<2x96xf32> to vector<2x32xf32>
    %25 = vector.extract_strided_slice %21 {offsets = [0, 32], sizes = [2, 32], strides = [1, 1]} : vector<2x96xf32> to vector<2x32xf32>
    %26 = vector.extract_strided_slice %21 {offsets = [0, 64], sizes = [2, 32], strides = [1, 1]} : vector<2x96xf32> to vector<2x32xf32>
    %27 = arith.mulf %25, %5 : vector<2x32xf32>
    %28 = arith.mulf %24, %23 : vector<2x32xf32>
    %29 = arith.addf %27, %28 : vector<2x32xf32>
    %30 = math.tanh %29 : vector<2x32xf32>
    %31 = arith.mulf %26, %30 : vector<2x32xf32>
    %32 = tpu.concatenate %31, %5 in 1 : vector<2x32xf32>, vector<2x32xf32> -> vector<2x64xf32>
    %cst_10 = arith.constant dense<0.000000e+00> : vector<2x128xf32>
    %33 = tpu.matmul %32, %3, %cst_10 {dimension_numbers = #tpu.dot_dimension_numbers<[1], [0], [0], [1], [0, 0, 1, 1], [], []>} : vector<2x64xf32>, vector<64x128xf32>, vector<2x128xf32> -> vector<2x128xf32>
    %34 = vector.broadcast %4 : vector<1x128xf32> to vector<2x128xf32>
    %35 = arith.addf %33, %34 : vector<2x128xf32>
    %36 = vector.extract_strided_slice %35 {offsets = [0, 0], sizes = [2, 96], strides = [1, 1]} : vector<2x128xf32> to vector<2x96xf32>
    %37 = arith.negf %36 : vector<2x96xf32>
    %38 = math.exp %37 : vector<2x96xf32>
    %cst_11 = arith.constant 1.000000e+00 : f32
    %39 = vector.broadcast %cst_11 : f32 to vector<2x96xf32>
    %40 = arith.addf %39, %38 : vector<2x96xf32>
    %41 = arith.divf %39, %40 : vector<2x96xf32>
    %42 = vector.extract_strided_slice %35 {offsets = [0, 96], sizes = [2, 32], strides = [1, 1]} : vector<2x128xf32> to vector<2x32xf32>
    %43 = math.tanh %42 : vector<2x32xf32>
    %44 = vector.extract_strided_slice %41 {offsets = [0, 0], sizes = [2, 32], strides = [1, 1]} : vector<2x96xf32> to vector<2x32xf32>
    %45 = vector.extract_strided_slice %41 {offsets = [0, 32], sizes = [2, 32], strides = [1, 1]} : vector<2x96xf32> to vector<2x32xf32>
    %46 = vector.extract_strided_slice %41 {offsets = [0, 64], sizes = [2, 32], strides = [1, 1]} : vector<2x96xf32> to vector<2x32xf32>
    %47 = arith.mulf %45, %5 : vector<2x32xf32>
    %48 = arith.mulf %44, %43 : vector<2x32xf32>
    %49 = arith.addf %47, %48 : vector<2x32xf32>
    %50 = math.tanh %49 : vector<2x32xf32>
    %51 = arith.mulf %46, %50 : vector<2x32xf32>
    %c1_i32 = arith.constant 1 : i32
    %52 = arith.index_cast %c1_i32 : i32 to index
    %c0_12 = arith.constant 0 : index
    %c0_13 = arith.constant 0 : index
    %53 = vector.load %arg0[%52, %c0_12, %c0_13] : memref<8x2x1xf32, #tpu.memory_space<vmem>>, vector<1x2x1xf32>
    %54 = vector.shape_cast %53 : vector<1x2x1xf32> to vector<2x1xf32>
    %55 = vector.broadcast %54 : vector<2x1xf32> to vector<2x128xf32>
    %56 = vector.broadcast %1 : vector<1x128xf32> to vector<2x128xf32>
    %57 = arith.mulf %55, %56 : vector<2x128xf32>
    %58 = vector.broadcast %2 : vector<1x128xf32> to vector<2x128xf32>
    %59 = arith.addf %57, %58 : vector<2x128xf32>
    %cst_14 = arith.constant dense<0.000000e+00> : vector<2x128xf32>
    %60 = tpu.matmul %31, %0, %cst_14 {dimension_numbers = #tpu.dot_dimension_numbers<[1], [0], [0], [1], [0, 0, 1, 1], [], []>} : vector<2x32xf32>, vector<32x128xf32>, vector<2x128xf32> -> vector<2x128xf32>
    %61 = arith.addf %59, %60 : vector<2x128xf32>
    %62 = vector.extract_strided_slice %61 {offsets = [0, 0], sizes = [2, 96], strides = [1, 1]} : vector<2x128xf32> to vector<2x96xf32>
    %63 = arith.negf %62 : vector<2x96xf32>
    %64 = math.exp %63 : vector<2x96xf32>
    %cst_15 = arith.constant 1.000000e+00 : f32
    %65 = vector.broadcast %cst_15 : f32 to vector<2x96xf32>
    %66 = arith.addf %65, %64 : vector<2x96xf32>
    %67 = arith.divf %65, %66 : vector<2x96xf32>
    %68 = vector.extract_strided_slice %61 {offsets = [0, 96], sizes = [2, 32], strides = [1, 1]} : vector<2x128xf32> to vector<2x32xf32>
    %69 = math.tanh %68 : vector<2x32xf32>
    %70 = vector.extract_strided_slice %67 {offsets = [0, 0], sizes = [2, 32], strides = [1, 1]} : vector<2x96xf32> to vector<2x32xf32>
    %71 = vector.extract_strided_slice %67 {offsets = [0, 32], sizes = [2, 32], strides = [1, 1]} : vector<2x96xf32> to vector<2x32xf32>
    %72 = vector.extract_strided_slice %67 {offsets = [0, 64], sizes = [2, 32], strides = [1, 1]} : vector<2x96xf32> to vector<2x32xf32>
    %73 = arith.mulf %71, %29 : vector<2x32xf32>
    %74 = arith.mulf %70, %69 : vector<2x32xf32>
    %75 = arith.addf %73, %74 : vector<2x32xf32>
    %76 = math.tanh %75 : vector<2x32xf32>
    %77 = arith.mulf %72, %76 : vector<2x32xf32>
    %78 = tpu.concatenate %77, %51 in 1 : vector<2x32xf32>, vector<2x32xf32> -> vector<2x64xf32>
    %cst_16 = arith.constant dense<0.000000e+00> : vector<2x128xf32>
    %79 = tpu.matmul %78, %3, %cst_16 {dimension_numbers = #tpu.dot_dimension_numbers<[1], [0], [0], [1], [0, 0, 1, 1], [], []>} : vector<2x64xf32>, vector<64x128xf32>, vector<2x128xf32> -> vector<2x128xf32>
    %80 = vector.broadcast %4 : vector<1x128xf32> to vector<2x128xf32>
    %81 = arith.addf %79, %80 : vector<2x128xf32>
    %82 = vector.extract_strided_slice %81 {offsets = [0, 0], sizes = [2, 96], strides = [1, 1]} : vector<2x128xf32> to vector<2x96xf32>
    %83 = arith.negf %82 : vector<2x96xf32>
    %84 = math.exp %83 : vector<2x96xf32>
    %cst_17 = arith.constant 1.000000e+00 : f32
    %85 = vector.broadcast %cst_17 : f32 to vector<2x96xf32>
    %86 = arith.addf %85, %84 : vector<2x96xf32>
    %87 = arith.divf %85, %86 : vector<2x96xf32>
    %88 = vector.extract_strided_slice %81 {offsets = [0, 96], sizes = [2, 32], strides = [1, 1]} : vector<2x128xf32> to vector<2x32xf32>
    %89 = math.tanh %88 : vector<2x32xf32>
    %90 = vector.extract_strided_slice %87 {offsets = [0, 0], sizes = [2, 32], strides = [1, 1]} : vector<2x96xf32> to vector<2x32xf32>
    %91 = vector.extract_strided_slice %87 {offsets = [0, 32], sizes = [2, 32], strides = [1, 1]} : vector<2x96xf32> to vector<2x32xf32>
    %92 = vector.extract_strided_slice %87 {offsets = [0, 64], sizes = [2, 32], strides = [1, 1]} : vector<2x96xf32> to vector<2x32xf32>
    %93 = arith.mulf %91, %49 : vector<2x32xf32>
    %94 = arith.mulf %90, %89 : vector<2x32xf32>
    %95 = arith.addf %93, %94 : vector<2x32xf32>
    %96 = math.tanh %95 : vector<2x32xf32>
    %97 = arith.mulf %92, %96 : vector<2x32xf32>
    %c2_i32 = arith.constant 2 : i32
    %98 = arith.index_cast %c2_i32 : i32 to index
    %c0_18 = arith.constant 0 : index
    %c0_19 = arith.constant 0 : index
    %99 = vector.load %arg0[%98, %c0_18, %c0_19] : memref<8x2x1xf32, #tpu.memory_space<vmem>>, vector<1x2x1xf32>
    %100 = vector.shape_cast %99 : vector<1x2x1xf32> to vector<2x1xf32>
    %101 = vector.broadcast %100 : vector<2x1xf32> to vector<2x128xf32>
    %102 = vector.broadcast %1 : vector<1x128xf32> to vector<2x128xf32>
    %103 = arith.mulf %101, %102 : vector<2x128xf32>
    %104 = vector.broadcast %2 : vector<1x128xf32> to vector<2x128xf32>
    %105 = arith.addf %103, %104 : vector<2x128xf32>
    %cst_20 = arith.constant dense<0.000000e+00> : vector<2x128xf32>
    %106 = tpu.matmul %77, %0, %cst_20 {dimension_numbers = #tpu.dot_dimension_numbers<[1], [0], [0], [1], [0, 0, 1, 1], [], []>} : vector<2x32xf32>, vector<32x128xf32>, vector<2x128xf32> -> vector<2x128xf32>
    %107 = arith.addf %105, %106 : vector<2x128xf32>
    %108 = vector.extract_strided_slice %107 {offsets = [0, 0], sizes = [2, 96], strides = [1, 1]} : vector<2x128xf32> to vector<2x96xf32>
    %109 = arith.negf %108 : vector<2x96xf32>
    %110 = math.exp %109 : vector<2x96xf32>
    %cst_21 = arith.constant 1.000000e+00 : f32
    %111 = vector.broadcast %cst_21 : f32 to vector<2x96xf32>
    %112 = arith.addf %111, %110 : vector<2x96xf32>
    %113 = arith.divf %111, %112 : vector<2x96xf32>
    %114 = vector.extract_strided_slice %107 {offsets = [0, 96], sizes = [2, 32], strides = [1, 1]} : vector<2x128xf32> to vector<2x32xf32>
    %115 = math.tanh %114 : vector<2x32xf32>
    %116 = vector.extract_strided_slice %113 {offsets = [0, 0], sizes = [2, 32], strides = [1, 1]} : vector<2x96xf32> to vector<2x32xf32>
    %117 = vector.extract_strided_slice %113 {offsets = [0, 32], sizes = [2, 32], strides = [1, 1]} : vector<2x96xf32> to vector<2x32xf32>
    %118 = vector.extract_strided_slice %113 {offsets = [0, 64], sizes = [2, 32], strides = [1, 1]} : vector<2x96xf32> to vector<2x32xf32>
    %119 = arith.mulf %117, %75 : vector<2x32xf32>
    %120 = arith.mulf %116, %115 : vector<2x32xf32>
    %121 = arith.addf %119, %120 : vector<2x32xf32>
    %122 = math.tanh %121 : vector<2x32xf32>
    %123 = arith.mulf %118, %122 : vector<2x32xf32>
    %124 = tpu.concatenate %123, %97 in 1 : vector<2x32xf32>, vector<2x32xf32> -> vector<2x64xf32>
    %cst_22 = arith.constant dense<0.000000e+00> : vector<2x128xf32>
    %125 = tpu.matmul %124, %3, %cst_22 {dimension_numbers = #tpu.dot_dimension_numbers<[1], [0], [0], [1], [0, 0, 1, 1], [], []>} : vector<2x64xf32>, vector<64x128xf32>, vector<2x128xf32> -> vector<2x128xf32>
    %126 = vector.broadcast %4 : vector<1x128xf32> to vector<2x128xf32>
    %127 = arith.addf %125, %126 : vector<2x128xf32>
    %128 = vector.extract_strided_slice %127 {offsets = [0, 0], sizes = [2, 96], strides = [1, 1]} : vector<2x128xf32> to vector<2x96xf32>
    %129 = arith.negf %128 : vector<2x96xf32>
    %130 = math.exp %129 : vector<2x96xf32>
    %cst_23 = arith.constant 1.000000e+00 : f32
    %131 = vector.broadcast %cst_23 : f32 to vector<2x96xf32>
    %132 = arith.addf %131, %130 : vector<2x96xf32>
    %133 = arith.divf %131, %132 : vector<2x96xf32>
    %134 = vector.extract_strided_slice %127 {offsets = [0, 96], sizes = [2, 32], strides = [1, 1]} : vector<2x128xf32> to vector<2x32xf32>
    %135 = math.tanh %134 : vector<2x32xf32>
    %136 = vector.extract_strided_slice %133 {offsets = [0, 0], sizes = [2, 32], strides = [1, 1]} : vector<2x96xf32> to vector<2x32xf32>
    %137 = vector.extract_strided_slice %133 {offsets = [0, 32], sizes = [2, 32], strides = [1, 1]} : vector<2x96xf32> to vector<2x32xf32>
    %138 = vector.extract_strided_slice %133 {offsets = [0, 64], sizes = [2, 32], strides = [1, 1]} : vector<2x96xf32> to vector<2x32xf32>
    %139 = arith.mulf %137, %95 : vector<2x32xf32>
    %140 = arith.mulf %136, %135 : vector<2x32xf32>
    %141 = arith.addf %139, %140 : vector<2x32xf32>
    %142 = math.tanh %141 : vector<2x32xf32>
    %143 = arith.mulf %138, %142 : vector<2x32xf32>
    %c3_i32 = arith.constant 3 : i32
    %144 = arith.index_cast %c3_i32 : i32 to index
    %c0_24 = arith.constant 0 : index
    %c0_25 = arith.constant 0 : index
    %145 = vector.load %arg0[%144, %c0_24, %c0_25] : memref<8x2x1xf32, #tpu.memory_space<vmem>>, vector<1x2x1xf32>
    %146 = vector.shape_cast %145 : vector<1x2x1xf32> to vector<2x1xf32>
    %147 = vector.broadcast %146 : vector<2x1xf32> to vector<2x128xf32>
    %148 = vector.broadcast %1 : vector<1x128xf32> to vector<2x128xf32>
    %149 = arith.mulf %147, %148 : vector<2x128xf32>
    %150 = vector.broadcast %2 : vector<1x128xf32> to vector<2x128xf32>
    %151 = arith.addf %149, %150 : vector<2x128xf32>
    %cst_26 = arith.constant dense<0.000000e+00> : vector<2x128xf32>
    %152 = tpu.matmul %123, %0, %cst_26 {dimension_numbers = #tpu.dot_dimension_numbers<[1], [0], [0], [1], [0, 0, 1, 1], [], []>} : vector<2x32xf32>, vector<32x128xf32>, vector<2x128xf32> -> vector<2x128xf32>
    %153 = arith.addf %151, %152 : vector<2x128xf32>
    %154 = vector.extract_strided_slice %153 {offsets = [0, 0], sizes = [2, 96], strides = [1, 1]} : vector<2x128xf32> to vector<2x96xf32>
    %155 = arith.negf %154 : vector<2x96xf32>
    %156 = math.exp %155 : vector<2x96xf32>
    %cst_27 = arith.constant 1.000000e+00 : f32
    %157 = vector.broadcast %cst_27 : f32 to vector<2x96xf32>
    %158 = arith.addf %157, %156 : vector<2x96xf32>
    %159 = arith.divf %157, %158 : vector<2x96xf32>
    %160 = vector.extract_strided_slice %153 {offsets = [0, 96], sizes = [2, 32], strides = [1, 1]} : vector<2x128xf32> to vector<2x32xf32>
    %161 = math.tanh %160 : vector<2x32xf32>
    %162 = vector.extract_strided_slice %159 {offsets = [0, 0], sizes = [2, 32], strides = [1, 1]} : vector<2x96xf32> to vector<2x32xf32>
    %163 = vector.extract_strided_slice %159 {offsets = [0, 32], sizes = [2, 32], strides = [1, 1]} : vector<2x96xf32> to vector<2x32xf32>
    %164 = vector.extract_strided_slice %159 {offsets = [0, 64], sizes = [2, 32], strides = [1, 1]} : vector<2x96xf32> to vector<2x32xf32>
    %165 = arith.mulf %163, %121 : vector<2x32xf32>
    %166 = arith.mulf %162, %161 : vector<2x32xf32>
    %167 = arith.addf %165, %166 : vector<2x32xf32>
    %168 = math.tanh %167 : vector<2x32xf32>
    %169 = arith.mulf %164, %168 : vector<2x32xf32>
    %170 = tpu.concatenate %169, %143 in 1 : vector<2x32xf32>, vector<2x32xf32> -> vector<2x64xf32>
    %cst_28 = arith.constant dense<0.000000e+00> : vector<2x128xf32>
    %171 = tpu.matmul %170, %3, %cst_28 {dimension_numbers = #tpu.dot_dimension_numbers<[1], [0], [0], [1], [0, 0, 1, 1], [], []>} : vector<2x64xf32>, vector<64x128xf32>, vector<2x128xf32> -> vector<2x128xf32>
    %172 = vector.broadcast %4 : vector<1x128xf32> to vector<2x128xf32>
    %173 = arith.addf %171, %172 : vector<2x128xf32>
    %174 = vector.extract_strided_slice %173 {offsets = [0, 0], sizes = [2, 96], strides = [1, 1]} : vector<2x128xf32> to vector<2x96xf32>
    %175 = arith.negf %174 : vector<2x96xf32>
    %176 = math.exp %175 : vector<2x96xf32>
    %cst_29 = arith.constant 1.000000e+00 : f32
    %177 = vector.broadcast %cst_29 : f32 to vector<2x96xf32>
    %178 = arith.addf %177, %176 : vector<2x96xf32>
    %179 = arith.divf %177, %178 : vector<2x96xf32>
    %180 = vector.extract_strided_slice %173 {offsets = [0, 96], sizes = [2, 32], strides = [1, 1]} : vector<2x128xf32> to vector<2x32xf32>
    %181 = math.tanh %180 : vector<2x32xf32>
    %182 = vector.extract_strided_slice %179 {offsets = [0, 0], sizes = [2, 32], strides = [1, 1]} : vector<2x96xf32> to vector<2x32xf32>
    %183 = vector.extract_strided_slice %179 {offsets = [0, 32], sizes = [2, 32], strides = [1, 1]} : vector<2x96xf32> to vector<2x32xf32>
    %184 = vector.extract_strided_slice %179 {offsets = [0, 64], sizes = [2, 32], strides = [1, 1]} : vector<2x96xf32> to vector<2x32xf32>
    %185 = arith.mulf %183, %141 : vector<2x32xf32>
    %186 = arith.mulf %182, %181 : vector<2x32xf32>
    %187 = arith.addf %185, %186 : vector<2x32xf32>
    %188 = math.tanh %187 : vector<2x32xf32>
    %189 = arith.mulf %184, %188 : vector<2x32xf32>
    %c4_i32 = arith.constant 4 : i32
    %190 = arith.index_cast %c4_i32 : i32 to index
    %c0_30 = arith.constant 0 : index
    %c0_31 = arith.constant 0 : index
    %191 = vector.load %arg0[%190, %c0_30, %c0_31] : memref<8x2x1xf32, #tpu.memory_space<vmem>>, vector<1x2x1xf32>
    %192 = vector.shape_cast %191 : vector<1x2x1xf32> to vector<2x1xf32>
    %193 = vector.broadcast %192 : vector<2x1xf32> to vector<2x128xf32>
    %194 = vector.broadcast %1 : vector<1x128xf32> to vector<2x128xf32>
    %195 = arith.mulf %193, %194 : vector<2x128xf32>
    %196 = vector.broadcast %2 : vector<1x128xf32> to vector<2x128xf32>
    %197 = arith.addf %195, %196 : vector<2x128xf32>
    %cst_32 = arith.constant dense<0.000000e+00> : vector<2x128xf32>
    %198 = tpu.matmul %169, %0, %cst_32 {dimension_numbers = #tpu.dot_dimension_numbers<[1], [0], [0], [1], [0, 0, 1, 1], [], []>} : vector<2x32xf32>, vector<32x128xf32>, vector<2x128xf32> -> vector<2x128xf32>
    %199 = arith.addf %197, %198 : vector<2x128xf32>
    %200 = vector.extract_strided_slice %199 {offsets = [0, 0], sizes = [2, 96], strides = [1, 1]} : vector<2x128xf32> to vector<2x96xf32>
    %201 = arith.negf %200 : vector<2x96xf32>
    %202 = math.exp %201 : vector<2x96xf32>
    %cst_33 = arith.constant 1.000000e+00 : f32
    %203 = vector.broadcast %cst_33 : f32 to vector<2x96xf32>
    %204 = arith.addf %203, %202 : vector<2x96xf32>
    %205 = arith.divf %203, %204 : vector<2x96xf32>
    %206 = vector.extract_strided_slice %199 {offsets = [0, 96], sizes = [2, 32], strides = [1, 1]} : vector<2x128xf32> to vector<2x32xf32>
    %207 = math.tanh %206 : vector<2x32xf32>
    %208 = vector.extract_strided_slice %205 {offsets = [0, 0], sizes = [2, 32], strides = [1, 1]} : vector<2x96xf32> to vector<2x32xf32>
    %209 = vector.extract_strided_slice %205 {offsets = [0, 32], sizes = [2, 32], strides = [1, 1]} : vector<2x96xf32> to vector<2x32xf32>
    %210 = vector.extract_strided_slice %205 {offsets = [0, 64], sizes = [2, 32], strides = [1, 1]} : vector<2x96xf32> to vector<2x32xf32>
    %211 = arith.mulf %209, %167 : vector<2x32xf32>
    %212 = arith.mulf %208, %207 : vector<2x32xf32>
    %213 = arith.addf %211, %212 : vector<2x32xf32>
    %214 = math.tanh %213 : vector<2x32xf32>
    %215 = arith.mulf %210, %214 : vector<2x32xf32>
    %216 = tpu.concatenate %215, %189 in 1 : vector<2x32xf32>, vector<2x32xf32> -> vector<2x64xf32>
    %cst_34 = arith.constant dense<0.000000e+00> : vector<2x128xf32>
    %217 = tpu.matmul %216, %3, %cst_34 {dimension_numbers = #tpu.dot_dimension_numbers<[1], [0], [0], [1], [0, 0, 1, 1], [], []>} : vector<2x64xf32>, vector<64x128xf32>, vector<2x128xf32> -> vector<2x128xf32>
    %218 = vector.broadcast %4 : vector<1x128xf32> to vector<2x128xf32>
    %219 = arith.addf %217, %218 : vector<2x128xf32>
    %220 = vector.extract_strided_slice %219 {offsets = [0, 0], sizes = [2, 96], strides = [1, 1]} : vector<2x128xf32> to vector<2x96xf32>
    %221 = arith.negf %220 : vector<2x96xf32>
    %222 = math.exp %221 : vector<2x96xf32>
    %cst_35 = arith.constant 1.000000e+00 : f32
    %223 = vector.broadcast %cst_35 : f32 to vector<2x96xf32>
    %224 = arith.addf %223, %222 : vector<2x96xf32>
    %225 = arith.divf %223, %224 : vector<2x96xf32>
    %226 = vector.extract_strided_slice %219 {offsets = [0, 96], sizes = [2, 32], strides = [1, 1]} : vector<2x128xf32> to vector<2x32xf32>
    %227 = math.tanh %226 : vector<2x32xf32>
    %228 = vector.extract_strided_slice %225 {offsets = [0, 0], sizes = [2, 32], strides = [1, 1]} : vector<2x96xf32> to vector<2x32xf32>
    %229 = vector.extract_strided_slice %225 {offsets = [0, 32], sizes = [2, 32], strides = [1, 1]} : vector<2x96xf32> to vector<2x32xf32>
    %230 = vector.extract_strided_slice %225 {offsets = [0, 64], sizes = [2, 32], strides = [1, 1]} : vector<2x96xf32> to vector<2x32xf32>
    %231 = arith.mulf %229, %187 : vector<2x32xf32>
    %232 = arith.mulf %228, %227 : vector<2x32xf32>
    %233 = arith.addf %231, %232 : vector<2x32xf32>
    %234 = math.tanh %233 : vector<2x32xf32>
    %235 = arith.mulf %230, %234 : vector<2x32xf32>
    %c5_i32 = arith.constant 5 : i32
    %236 = arith.index_cast %c5_i32 : i32 to index
    %c0_36 = arith.constant 0 : index
    %c0_37 = arith.constant 0 : index
    %237 = vector.load %arg0[%236, %c0_36, %c0_37] : memref<8x2x1xf32, #tpu.memory_space<vmem>>, vector<1x2x1xf32>
    %238 = vector.shape_cast %237 : vector<1x2x1xf32> to vector<2x1xf32>
    %239 = vector.broadcast %238 : vector<2x1xf32> to vector<2x128xf32>
    %240 = vector.broadcast %1 : vector<1x128xf32> to vector<2x128xf32>
    %241 = arith.mulf %239, %240 : vector<2x128xf32>
    %242 = vector.broadcast %2 : vector<1x128xf32> to vector<2x128xf32>
    %243 = arith.addf %241, %242 : vector<2x128xf32>
    %cst_38 = arith.constant dense<0.000000e+00> : vector<2x128xf32>
    %244 = tpu.matmul %215, %0, %cst_38 {dimension_numbers = #tpu.dot_dimension_numbers<[1], [0], [0], [1], [0, 0, 1, 1], [], []>} : vector<2x32xf32>, vector<32x128xf32>, vector<2x128xf32> -> vector<2x128xf32>
    %245 = arith.addf %243, %244 : vector<2x128xf32>
    %246 = vector.extract_strided_slice %245 {offsets = [0, 0], sizes = [2, 96], strides = [1, 1]} : vector<2x128xf32> to vector<2x96xf32>
    %247 = arith.negf %246 : vector<2x96xf32>
    %248 = math.exp %247 : vector<2x96xf32>
    %cst_39 = arith.constant 1.000000e+00 : f32
    %249 = vector.broadcast %cst_39 : f32 to vector<2x96xf32>
    %250 = arith.addf %249, %248 : vector<2x96xf32>
    %251 = arith.divf %249, %250 : vector<2x96xf32>
    %252 = vector.extract_strided_slice %245 {offsets = [0, 96], sizes = [2, 32], strides = [1, 1]} : vector<2x128xf32> to vector<2x32xf32>
    %253 = math.tanh %252 : vector<2x32xf32>
    %254 = vector.extract_strided_slice %251 {offsets = [0, 0], sizes = [2, 32], strides = [1, 1]} : vector<2x96xf32> to vector<2x32xf32>
    %255 = vector.extract_strided_slice %251 {offsets = [0, 32], sizes = [2, 32], strides = [1, 1]} : vector<2x96xf32> to vector<2x32xf32>
    %256 = vector.extract_strided_slice %251 {offsets = [0, 64], sizes = [2, 32], strides = [1, 1]} : vector<2x96xf32> to vector<2x32xf32>
    %257 = arith.mulf %255, %213 : vector<2x32xf32>
    %258 = arith.mulf %254, %253 : vector<2x32xf32>
    %259 = arith.addf %257, %258 : vector<2x32xf32>
    %260 = math.tanh %259 : vector<2x32xf32>
    %261 = arith.mulf %256, %260 : vector<2x32xf32>
    %262 = tpu.concatenate %261, %235 in 1 : vector<2x32xf32>, vector<2x32xf32> -> vector<2x64xf32>
    %cst_40 = arith.constant dense<0.000000e+00> : vector<2x128xf32>
    %263 = tpu.matmul %262, %3, %cst_40 {dimension_numbers = #tpu.dot_dimension_numbers<[1], [0], [0], [1], [0, 0, 1, 1], [], []>} : vector<2x64xf32>, vector<64x128xf32>, vector<2x128xf32> -> vector<2x128xf32>
    %264 = vector.broadcast %4 : vector<1x128xf32> to vector<2x128xf32>
    %265 = arith.addf %263, %264 : vector<2x128xf32>
    %266 = vector.extract_strided_slice %265 {offsets = [0, 0], sizes = [2, 96], strides = [1, 1]} : vector<2x128xf32> to vector<2x96xf32>
    %267 = arith.negf %266 : vector<2x96xf32>
    %268 = math.exp %267 : vector<2x96xf32>
    %cst_41 = arith.constant 1.000000e+00 : f32
    %269 = vector.broadcast %cst_41 : f32 to vector<2x96xf32>
    %270 = arith.addf %269, %268 : vector<2x96xf32>
    %271 = arith.divf %269, %270 : vector<2x96xf32>
    %272 = vector.extract_strided_slice %265 {offsets = [0, 96], sizes = [2, 32], strides = [1, 1]} : vector<2x128xf32> to vector<2x32xf32>
    %273 = math.tanh %272 : vector<2x32xf32>
    %274 = vector.extract_strided_slice %271 {offsets = [0, 0], sizes = [2, 32], strides = [1, 1]} : vector<2x96xf32> to vector<2x32xf32>
    %275 = vector.extract_strided_slice %271 {offsets = [0, 32], sizes = [2, 32], strides = [1, 1]} : vector<2x96xf32> to vector<2x32xf32>
    %276 = vector.extract_strided_slice %271 {offsets = [0, 64], sizes = [2, 32], strides = [1, 1]} : vector<2x96xf32> to vector<2x32xf32>
    %277 = arith.mulf %275, %233 : vector<2x32xf32>
    %278 = arith.mulf %274, %273 : vector<2x32xf32>
    %279 = arith.addf %277, %278 : vector<2x32xf32>
    %280 = math.tanh %279 : vector<2x32xf32>
    %281 = arith.mulf %276, %280 : vector<2x32xf32>
    %c6_i32 = arith.constant 6 : i32
    %282 = arith.index_cast %c6_i32 : i32 to index
    %c0_42 = arith.constant 0 : index
    %c0_43 = arith.constant 0 : index
    %283 = vector.load %arg0[%282, %c0_42, %c0_43] : memref<8x2x1xf32, #tpu.memory_space<vmem>>, vector<1x2x1xf32>
    %284 = vector.shape_cast %283 : vector<1x2x1xf32> to vector<2x1xf32>
    %285 = vector.broadcast %284 : vector<2x1xf32> to vector<2x128xf32>
    %286 = vector.broadcast %1 : vector<1x128xf32> to vector<2x128xf32>
    %287 = arith.mulf %285, %286 : vector<2x128xf32>
    %288 = vector.broadcast %2 : vector<1x128xf32> to vector<2x128xf32>
    %289 = arith.addf %287, %288 : vector<2x128xf32>
    %cst_44 = arith.constant dense<0.000000e+00> : vector<2x128xf32>
    %290 = tpu.matmul %261, %0, %cst_44 {dimension_numbers = #tpu.dot_dimension_numbers<[1], [0], [0], [1], [0, 0, 1, 1], [], []>} : vector<2x32xf32>, vector<32x128xf32>, vector<2x128xf32> -> vector<2x128xf32>
    %291 = arith.addf %289, %290 : vector<2x128xf32>
    %292 = vector.extract_strided_slice %291 {offsets = [0, 0], sizes = [2, 96], strides = [1, 1]} : vector<2x128xf32> to vector<2x96xf32>
    %293 = arith.negf %292 : vector<2x96xf32>
    %294 = math.exp %293 : vector<2x96xf32>
    %cst_45 = arith.constant 1.000000e+00 : f32
    %295 = vector.broadcast %cst_45 : f32 to vector<2x96xf32>
    %296 = arith.addf %295, %294 : vector<2x96xf32>
    %297 = arith.divf %295, %296 : vector<2x96xf32>
    %298 = vector.extract_strided_slice %291 {offsets = [0, 96], sizes = [2, 32], strides = [1, 1]} : vector<2x128xf32> to vector<2x32xf32>
    %299 = math.tanh %298 : vector<2x32xf32>
    %300 = vector.extract_strided_slice %297 {offsets = [0, 0], sizes = [2, 32], strides = [1, 1]} : vector<2x96xf32> to vector<2x32xf32>
    %301 = vector.extract_strided_slice %297 {offsets = [0, 32], sizes = [2, 32], strides = [1, 1]} : vector<2x96xf32> to vector<2x32xf32>
    %302 = vector.extract_strided_slice %297 {offsets = [0, 64], sizes = [2, 32], strides = [1, 1]} : vector<2x96xf32> to vector<2x32xf32>
    %303 = arith.mulf %301, %259 : vector<2x32xf32>
    %304 = arith.mulf %300, %299 : vector<2x32xf32>
    %305 = arith.addf %303, %304 : vector<2x32xf32>
    %306 = math.tanh %305 : vector<2x32xf32>
    %307 = arith.mulf %302, %306 : vector<2x32xf32>
    %308 = tpu.concatenate %307, %281 in 1 : vector<2x32xf32>, vector<2x32xf32> -> vector<2x64xf32>
    %cst_46 = arith.constant dense<0.000000e+00> : vector<2x128xf32>
    %309 = tpu.matmul %308, %3, %cst_46 {dimension_numbers = #tpu.dot_dimension_numbers<[1], [0], [0], [1], [0, 0, 1, 1], [], []>} : vector<2x64xf32>, vector<64x128xf32>, vector<2x128xf32> -> vector<2x128xf32>
    %310 = vector.broadcast %4 : vector<1x128xf32> to vector<2x128xf32>
    %311 = arith.addf %309, %310 : vector<2x128xf32>
    %312 = vector.extract_strided_slice %311 {offsets = [0, 0], sizes = [2, 96], strides = [1, 1]} : vector<2x128xf32> to vector<2x96xf32>
    %313 = arith.negf %312 : vector<2x96xf32>
    %314 = math.exp %313 : vector<2x96xf32>
    %cst_47 = arith.constant 1.000000e+00 : f32
    %315 = vector.broadcast %cst_47 : f32 to vector<2x96xf32>
    %316 = arith.addf %315, %314 : vector<2x96xf32>
    %317 = arith.divf %315, %316 : vector<2x96xf32>
    %318 = vector.extract_strided_slice %311 {offsets = [0, 96], sizes = [2, 32], strides = [1, 1]} : vector<2x128xf32> to vector<2x32xf32>
    %319 = math.tanh %318 : vector<2x32xf32>
    %320 = vector.extract_strided_slice %317 {offsets = [0, 0], sizes = [2, 32], strides = [1, 1]} : vector<2x96xf32> to vector<2x32xf32>
    %321 = vector.extract_strided_slice %317 {offsets = [0, 32], sizes = [2, 32], strides = [1, 1]} : vector<2x96xf32> to vector<2x32xf32>
    %322 = vector.extract_strided_slice %317 {offsets = [0, 64], sizes = [2, 32], strides = [1, 1]} : vector<2x96xf32> to vector<2x32xf32>
    %323 = arith.mulf %321, %279 : vector<2x32xf32>
    %324 = arith.mulf %320, %319 : vector<2x32xf32>
    %325 = arith.addf %323, %324 : vector<2x32xf32>
    %326 = math.tanh %325 : vector<2x32xf32>
    %327 = arith.mulf %322, %326 : vector<2x32xf32>
    %c7_i32 = arith.constant 7 : i32
    %328 = arith.index_cast %c7_i32 : i32 to index
    %c0_48 = arith.constant 0 : index
    %c0_49 = arith.constant 0 : index
    %329 = vector.load %arg0[%328, %c0_48, %c0_49] : memref<8x2x1xf32, #tpu.memory_space<vmem>>, vector<1x2x1xf32>
    %330 = vector.shape_cast %329 : vector<1x2x1xf32> to vector<2x1xf32>
    %331 = vector.broadcast %330 : vector<2x1xf32> to vector<2x128xf32>
    %332 = vector.broadcast %1 : vector<1x128xf32> to vector<2x128xf32>
    %333 = arith.mulf %331, %332 : vector<2x128xf32>
    %334 = vector.broadcast %2 : vector<1x128xf32> to vector<2x128xf32>
    %335 = arith.addf %333, %334 : vector<2x128xf32>
    %cst_50 = arith.constant dense<0.000000e+00> : vector<2x128xf32>
    %336 = tpu.matmul %307, %0, %cst_50 {dimension_numbers = #tpu.dot_dimension_numbers<[1], [0], [0], [1], [0, 0, 1, 1], [], []>} : vector<2x32xf32>, vector<32x128xf32>, vector<2x128xf32> -> vector<2x128xf32>
    %337 = arith.addf %335, %336 : vector<2x128xf32>
    %338 = vector.extract_strided_slice %337 {offsets = [0, 0], sizes = [2, 96], strides = [1, 1]} : vector<2x128xf32> to vector<2x96xf32>
    %339 = arith.negf %338 : vector<2x96xf32>
    %340 = math.exp %339 : vector<2x96xf32>
    %cst_51 = arith.constant 1.000000e+00 : f32
    %341 = vector.broadcast %cst_51 : f32 to vector<2x96xf32>
    %342 = arith.addf %341, %340 : vector<2x96xf32>
    %343 = arith.divf %341, %342 : vector<2x96xf32>
    %344 = vector.extract_strided_slice %337 {offsets = [0, 96], sizes = [2, 32], strides = [1, 1]} : vector<2x128xf32> to vector<2x32xf32>
    %345 = math.tanh %344 : vector<2x32xf32>
    %346 = vector.extract_strided_slice %343 {offsets = [0, 0], sizes = [2, 32], strides = [1, 1]} : vector<2x96xf32> to vector<2x32xf32>
    %347 = vector.extract_strided_slice %343 {offsets = [0, 32], sizes = [2, 32], strides = [1, 1]} : vector<2x96xf32> to vector<2x32xf32>
    %348 = vector.extract_strided_slice %343 {offsets = [0, 64], sizes = [2, 32], strides = [1, 1]} : vector<2x96xf32> to vector<2x32xf32>
    %349 = arith.mulf %347, %305 : vector<2x32xf32>
    %350 = arith.mulf %346, %345 : vector<2x32xf32>
    %351 = arith.addf %349, %350 : vector<2x32xf32>
    %352 = math.tanh %351 : vector<2x32xf32>
    %353 = arith.mulf %348, %352 : vector<2x32xf32>
    %354 = tpu.concatenate %353, %327 in 1 : vector<2x32xf32>, vector<2x32xf32> -> vector<2x64xf32>
    %cst_52 = arith.constant dense<0.000000e+00> : vector<2x128xf32>
    %355 = tpu.matmul %354, %3, %cst_52 {dimension_numbers = #tpu.dot_dimension_numbers<[1], [0], [0], [1], [0, 0, 1, 1], [], []>} : vector<2x64xf32>, vector<64x128xf32>, vector<2x128xf32> -> vector<2x128xf32>
    %356 = vector.broadcast %4 : vector<1x128xf32> to vector<2x128xf32>
    %357 = arith.addf %355, %356 : vector<2x128xf32>
    %358 = vector.extract_strided_slice %357 {offsets = [0, 0], sizes = [2, 96], strides = [1, 1]} : vector<2x128xf32> to vector<2x96xf32>
    %359 = arith.negf %358 : vector<2x96xf32>
    %360 = math.exp %359 : vector<2x96xf32>
    %cst_53 = arith.constant 1.000000e+00 : f32
    %361 = vector.broadcast %cst_53 : f32 to vector<2x96xf32>
    %362 = arith.addf %361, %360 : vector<2x96xf32>
    %363 = arith.divf %361, %362 : vector<2x96xf32>
    %364 = vector.extract_strided_slice %357 {offsets = [0, 96], sizes = [2, 32], strides = [1, 1]} : vector<2x128xf32> to vector<2x32xf32>
    %365 = math.tanh %364 : vector<2x32xf32>
    %366 = vector.extract_strided_slice %363 {offsets = [0, 0], sizes = [2, 32], strides = [1, 1]} : vector<2x96xf32> to vector<2x32xf32>
    %367 = vector.extract_strided_slice %363 {offsets = [0, 32], sizes = [2, 32], strides = [1, 1]} : vector<2x96xf32> to vector<2x32xf32>
    %368 = vector.extract_strided_slice %363 {offsets = [0, 64], sizes = [2, 32], strides = [1, 1]} : vector<2x96xf32> to vector<2x32xf32>
    %369 = arith.mulf %367, %325 : vector<2x32xf32>
    %370 = arith.mulf %366, %365 : vector<2x32xf32>
    %371 = arith.addf %369, %370 : vector<2x32xf32>
    %372 = math.tanh %371 : vector<2x32xf32>
    %373 = arith.mulf %368, %372 : vector<2x32xf32>
    %c8_i32 = arith.constant 8 : i32
    %c0_54 = arith.constant 0 : index
    %c0_55 = arith.constant 0 : index
    %374 = vector.load %arg3[%c0_54, %c0_55] : memref<33x1xf32, #tpu.memory_space<vmem>>, vector<32x1xf32>
    %cst_56 = arith.constant dense<0.000000e+00> : vector<2x1xf32>
    %375 = tpu.matmul %373, %374, %cst_56 {dimension_numbers = #tpu.dot_dimension_numbers<[1], [0], [0], [1], [0, 0, 1, 1], [], []>} : vector<2x32xf32>, vector<32x1xf32>, vector<2x1xf32> -> vector<2x1xf32>
    %c32_57 = arith.constant 32 : index
    %c0_58 = arith.constant 0 : index
    %376 = vector.load %arg3[%c32_57, %c0_58] : memref<33x1xf32, #tpu.memory_space<vmem>>, vector<1x1xf32>
    %377 = vector.broadcast %376 : vector<1x1xf32> to vector<2x1xf32>
    %378 = arith.addf %375, %377 : vector<2x1xf32>
    %c0_59 = arith.constant 0 : index
    %c0_60 = arith.constant 0 : index
    %379 = vector.load %arg4[%c0_59, %c0_60] : memref<2x1xf32, #tpu.memory_space<vmem>>, vector<2x1xf32>
    tpu.vector_store %arg4[%c0_59, %c0_60], %378 {strides = array<i32>} : memref<2x1xf32, #tpu.memory_space<vmem>>, vector<2x1xf32>,
    return
  }
}

</mosaic_0001>

<bundles_post_ra>
// kernel: tpu_custom_call.1
= control target key start
LH: loop header
LB: loop body
LE: loop exit
PB: predicated region body
PF: predicated region fallthrough
CT: control target
= control target key end

     0   :  { %9 = vsyncpa [#allocation3], 0  ;;  %s2430_s15 = smov [#allocation2]   ;;  %s2955_s0 = inlined_call_operand.vmem [shape: f32[8,2,1], index: 0, kind: input, shape index: {}]   ;;  %s2956_s1 = inlined_call_operand.vmem [shape: f32[34,128], index: 1, kind: input, shape index: {}]   ;;  %s2957_s2 = inlined_call_operand.hbm [shape: f32[65,128], index: 2, kind: input, shape index: {}]   ;;  %s2958_s3 = inlined_call_operand.vmem [shape: f32[33,1], index: 3, kind: input, shape index: {}]   ;;  %s2959_s4 = inlined_call_operand.vmem [shape: f32[2,1], index: 4, kind: output, shape index: {}]  }
   0x1   :  { %s19_s16 = sshll.u32 %s2430_s15, 4  ;;  %s20_s16 = int_to_ptr.vmem [resolvable:$true] %s19_s16 }
   0x2   :  { %s2416_s17 = scalar_lea.vmem %s20_s16, 1152  ;;  %p2421_p1 = scmp.lt.s32.totalorder %s20_s16, %s20_s16 }
   0x3   :  { %p2417_p0 = scmp.ne.s32.totalorder %s20_s16, %s2416_s17  ;;  %p2422_p2 = scmp.lt.s32.totalorder %s2416_s17, %s2416_s17 }
   0x5   :  { %p2423_p3 = por %p2422_p2, %p2421_p1 }
   0x7   :  { %p2424_p4 = pnand %p2423_p3, %p2417_p0 }
   0x9   :  { %2427 = shalt.err (!%p2424_p4)
}
   0xa   :  { %s2431_s18 = smov 128   ;;  %s2432_s19 = smov 8  }
   0xb   :  { %25 = dma.hbm_to_vmem [thread:$0]  %s2957_s2, 1152, %s20_s16, [#allocation3], %s2431_s18, %s2431_s18, %s2432_s19  }
   0xc   :  { %2428 = dma.done.wait [#allocation3], 1152  }
   0xd   :  { %2429 = vsyncadd [#allocation3], 4294966144  ;;  %v2433_v0 = vmov 0.0   ;;  %vm2434_vm0 = vmmov 0   ;;  %v2435_v1 = vmov 0   ;;  %v2476_v2 = vld [vmem:[%s2956_s1 + $0x18] sm:$0xff] }
   0xe   :  { %2003 = vmatprep.subr.mxu0 %v2433_v0  ;;  %2011 = vmatprep.mubr.msk.f32.mxu0 %vm2434_vm0, %v2433_v0  ;;  %v2481_v3 = vld [vmem:[%s2956_s1 + $0x10] sm:$0xff]  ;;  %v46_v4 = vld [vmem:[%s2955_s0] sm:$0x3]  ;;  %v2491_v5 = vld [vmem:[%s2956_s1 + $0x8] sm:$0xff]  ;;  %s2436_s9 = smov 32   ;;  %s2437_s12 = smov 64  }
   0xf   :  { %2263 = vset.pattern.permute.xlu0 %v2435_v1  ;;  %2014 = vmatprep.subr.mxu1 %v2433_v0  ;;  %v2498_v6 = vld [vmem:[%s2956_s1] sm:$0xff]  ;;  %v2532_v25 = vld [vmem:[#allocation2 + $0x38] sm:$0xff]  ;;  %v2534_v26 = vld [vmem:[#allocation2 + $0x30] sm:$0xff]  ;;  %vm62_vm1 = vcmask 261120   ;;  %vm170_vm2 = vcmask 523264   ;;  %s2438_s13 = smov 96  }
  0x10   :  { %2030 = vmatprep.mubr.msk.f32.mxu1 %vm2434_vm0, %v2433_v0  ;;  %2264 = vset.pattern.permute.xlu1 %v2435_v1  ;;  %v2518_v8 = vld [vmem:[%s2956_s1 + $0x20] ss:$0 sm:$0xff]  ;;  %v2524_v10 = vld [vmem:[%s2956_s1 + $0x21] ss:$0 sm:$0xff]  ;;  %v2538_v27 = vld [vmem:[#allocation2 + $0x28] sm:$0xff]  ;;  %vm1836_vm3 = vcmask 1024  }
  0x11   :  { %2004 = vmatpush3.msra.mxu0 %v2476_v2  ;;  %49 = vperm.xlu0 %2263, %v46_v4   ;;  %v2542_v28 = vld [vmem:[#allocation2 + $0x20] sm:$0xff]  ;;  %v2546_v29 = vld [vmem:[#allocation2 + $0x18] sm:$0xff]  ;;  %v2550_v30 = vld [vmem:[#allocation2 + $0x10] sm:$0xff] }
  0x12   :  { %2005 = vmatprep.subr.mxu0 %v2433_v0  ;;  %2015 = vmatpush3.msra.mxu1 %v2532_v25  ;;  %v2554_v32 = vld [vmem:[#allocation2 + $0x8] sm:$0xff]  ;;  %v2561_v33 = vld [vmem:[#allocation2] sm:$0xff] }
  0x13   :  { %2006 = vmatpush3.msra.mxu0 %v2481_v3  ;;  %2016 = vmatprep.subr.mxu1 %v2433_v0  ;;  %v1849_v34 = vld [vmem:[%s2955_s0 + $0x2] sm:$0x3]  ;;  %v2602_v42 = vld [vmem:[#allocation2 + $0x40] ss:$0 sm:$0xff] }
  0x14   :  { %2007 = vmatprep.subr.mxu0 %v2433_v0  ;;  %2017 = vmatpush3.msra.mxu1 %v2534_v26 }
  0x15   :  { %2008 = vmatpush3.msra.mxu0 %v2491_v5  ;;  %2018 = vmatprep.subr.mxu1 %v2433_v0 }
  0x16   :  { %2009 = vmatprep.subr.mxu0 %v2433_v0  ;;  %2019 = vmatpush3.msra.mxu1 %v2538_v27 }
  0x17   :  { %2010 = vmatpush3.msra.mxu0 %v2498_v6  ;;  %2020 = vmatprep.subr.mxu1 %v2433_v0 }
  0x18   :  { %2012 = vmatmul.mubr.f32.vlgmr.msra.gmra.mxu0 %v2433_v0  ;;  %2033 = vmatprep.subr.mxu0 %v2433_v0 }
  0x19   :  { %2034 = vmatpush3.msra.mxu0 %v2476_v2  ;;  %2041 = vmatprep.mubr.msk.f32.mxu0 %vm2434_vm0, %v2433_v0 }
  0x1a   :  { %2035 = vmatprep.subr.mxu0 %v2433_v0  ;;  %2021 = vmatpush3.msra.mxu1 %v2542_v28 }
  0x1b   :  { %2036 = vmatpush3.msra.mxu0 %v2481_v3  ;;  %2022 = vmatprep.subr.mxu1 %v2433_v0 }
  0x1c   :  { %2037 = vmatprep.subr.mxu0 %v2433_v0  ;;  %2023 = vmatpush3.msra.mxu1 %v2546_v29 }
  0x1d   :  { %2038 = vmatpush3.msra.mxu0 %v2491_v5  ;;  %2024 = vmatprep.subr.mxu1 %v2433_v0 }
  0x1e   :  { %2039 = vmatprep.subr.mxu0 %v2433_v0  ;;  %2025 = vmatpush3.msra.mxu1 %v2550_v30 }
  0x1f   :  { %2040 = vmatpush3.msra.mxu0 %v2498_v6  ;;  %2026 = vmatprep.subr.mxu1 %v2433_v0 }
  0x20   :  { %2044 = vmatprep.subr.mxu0 %v2433_v0  ;;  %2027 = vmatpush3.msra.mxu1 %v2554_v32 }
  0x21   :  { %2028 = vmatprep.subr.mxu1 %v2433_v0 }
  0x22   :  { %2029 = vmatpush3.msra.mxu1 %v2561_v33 }
  0x23   :  { %2063 = vmatprep.subr.mxu1 %v2433_v0 }
  0x8c   :  { %v50_v7 = vpop.permute.xlu0 %49 }
  0x8d   :  { %v56_v9 = vmul.f32 %v2518_v8, %v50_v7 }
  0x8f   :  { %v61_v11 = vadd.f32 %v2524_v10, %v56_v9 }
  0xd8   :  { %v132_v12 = vpop.f32.mrf.mxu0 }
  0xd9   :  { %v136_v13 = vadd.f32 %v132_v12, %v61_v11 }
  0xda   :  { %v2013_v14 = vpop.f32.mrf.mxu0 }
  0xdb   :  { %2265 = vtanh.f32 %v136_v13  ;;  %v1845_v16 = vmul.f32 -1.442695, %v136_v13 }
  0xdd   :  { %2267 = vpow2.f32 %v1845_v16 }
  0xe8   :  { %v2266_v15 = vpop.eup %2265 }
  0xe9   :  { %146 = vrot.lane.b32.xlu0 %v2266_v15, %s2436_s9 }
  0xea   :  { %v2268_v17 = vpop.eup %2267 }
  0xeb   :  { %v140_v18 = vadd.f32 1.0, %v2268_v17 }
  0xed   :  { %2269 = vrcp.f32 %v140_v18  ;;  %v1854_v18 = vld [vmem:[%s2955_s0 + $0x4] sm:$0x3] }
  0xfa   :  { %v2270_v19 = vpop.eup %2269 }
  0xfb   :  { %v144_v22 = vmul.f32 0.0, %v2270_v19 }
 0x15b   :  { %v147_v20 = vpop.permute.xlu0 %146 }
 0x15c   :  { %v149_v21 = vmul.f32 %v2270_v19, %v147_v20 }
 0x15e   :  { %151 = vrot.lane.b32.xlu1 %v149_v21, %s2436_s9 }
 0x1d0   :  { %v152_v23 = vpop.permute.xlu1 %151 }
 0x1d1   :  { %v2529_v24 = vadd.f32 %v152_v23, %v144_v22 }
 0x1d3   :  { %2271 = vtanh.f32 %v2529_v24 }
 0x1e0   :  { %v2272_v31 = vpop.eup %2271 }
 0x1e1   :  { %157 = vrot.lane.b32.xlu1 %v2272_v31, %s2436_s9 }
 0x1e5   :  { %272 = vperm.xlu1 %2264, %v1849_v34  }
 0x253   :  { %v158_v35 = vpop.permute.xlu1 %157 }
 0x254   :  { %v160_v36 = vmul.f32 %v2270_v19, %v158_v35 }
 0x256   :  { %162 = vrot.lane.b32.xlu0 %v160_v36, %s2437_s12 }
 0x260   :  { %v273_v39 = vpop.permute.xlu1 %272 }
 0x261   :  { %v275_v40 = vmul.f32 %v2518_v8, %v273_v39 }
 0x263   :  { %v276_v41 = vadd.f32 %v2524_v10, %v275_v40 }
 0x2c8   :  { %v163_v37 = vpop.permute.xlu0 %162 }
 0x2c9   :  { %v165_v38 = vsel %vm62_vm1, %v163_v37, 0.0  ;;  %2042 = vmatmul.mubr.msk.f32.vlgmr.msra.gmra.mxu0 %vm62_vm1, %v163_v37 }
 0x2ca   :  { %2031 = vmatmul.mubr.msk.f32.vlgmr.msra.gmra.mxu1 %vm170_vm2, %v165_v38  ;;  %2045 = vmatpush3.msra.mxu0 %v2532_v25 }
 0x2cb   :  { %2046 = vmatprep.subr.mxu0 %v2433_v0  ;;  %2064 = vmatpush3.msra.mxu1 %v2476_v2 }
 0x2cc   :  { %2047 = vmatpush3.msra.mxu0 %v2534_v26  ;;  %2065 = vmatprep.subr.mxu1 %v2433_v0 }
 0x2cd   :  { %2048 = vmatprep.subr.mxu0 %v2433_v0  ;;  %2066 = vmatpush3.msra.mxu1 %v2481_v3 }
 0x2ce   :  { %2049 = vmatpush3.msra.mxu0 %v2538_v27  ;;  %2067 = vmatprep.subr.mxu1 %v2433_v0 }
 0x2cf   :  { %2050 = vmatprep.subr.mxu0 %v2433_v0  ;;  %2068 = vmatpush3.msra.mxu1 %v2491_v5 }
 0x2d0   :  { %2051 = vmatpush3.msra.mxu0 %v2542_v28  ;;  %2069 = vmatprep.subr.mxu1 %v2433_v0 }
 0x2d1   :  { %2052 = vmatprep.subr.mxu0 %v2433_v0  ;;  %2070 = vmatpush3.msra.mxu1 %v2498_v6 }
 0x2d2   :  { %2053 = vmatpush3.msra.mxu0 %v2546_v29  ;;  %2071 = vmatprep.mubr.msk.f32.mxu1 %vm2434_vm0, %v2433_v0 }
 0x2d3   :  { %2054 = vmatprep.subr.mxu0 %v2433_v0  ;;  %2060 = vmatprep.mubr.msk.f32.mxu0 %vm2434_vm0, %v2433_v0 }
 0x2d4   :  { %2055 = vmatpush3.msra.mxu0 %v2550_v30  ;;  %2074 = vmatprep.subr.mxu1 %v2433_v0 }
 0x2d5   :  { %2056 = vmatprep.subr.mxu0 %v2433_v0 }
 0x2d6   :  { %2057 = vmatpush3.msra.mxu0 %v2554_v32 }
 0x2d7   :  { %2058 = vmatprep.subr.mxu0 %v2433_v0 }
 0x2d8   :  { %2059 = vmatpush3.msra.mxu0 %v2561_v33 }
 0x2d9   :  { %2093 = vmatprep.subr.mxu0 %v2433_v0 }
 0x389   :  { %v345_v43 = vpop.f32.mrf.mxu0 }
 0x38a   :  { %v349_v44 = vadd.f32 %v345_v43, %v276_v41  ;;  %v240_v45 = vpop.f32.mrf.mxu1 }
 0x38b   :  { %v241_v46 = vadd.f32 %v2602_v42, %v240_v45  ;;  %v2043_v47 = vpop.f32.mrf.mxu0 }
 0x38c   :  { %2273 = vtanh.f32 %v349_v44  ;;  %v2032_v48 = vpop.f32.mrf.mxu1  ;;  %v1851_v51 = vmul.f32 -1.442695, %v349_v44 }
 0x38d   :  { %2275 = vtanh.f32 %v241_v46  ;;  %v1848_v52 = vmul.f32 -1.442695, %v241_v46 }
 0x38e   :  { %2277 = vpow2.f32 %v1851_v51 }
 0x38f   :  { %2279 = vpow2.f32 %v1848_v52 }
 0x399   :  { %v2274_v49 = vpop.eup %2273 }
 0x39a   :  { %v2276_v50 = vpop.eup %2275  ;;  %359 = vrot.lane.b32.xlu1 %v2274_v49, %s2436_s9 }
 0x39b   :  { %253 = vrot.lane.b32.xlu0 %v2276_v50, %s2436_s9  ;;  %v2278_v53 = vpop.eup %2277 }
 0x39c   :  { %v2280_v54 = vpop.eup %2279  ;;  %v353_v55 = vadd.f32 1.0, %v2278_v53 }
 0x39d   :  { %v247_v56 = vadd.f32 1.0, %v2280_v54 }
 0x39e   :  { %2281 = vrcp.f32 %v353_v55 }
 0x39f   :  { %2283 = vrcp.f32 %v247_v56 }
 0x3ab   :  { %v2282_v57 = vpop.eup %2281 }
 0x3ac   :  { %v2284_v59 = vpop.eup %2283  ;;  %v357_v63 = vmul.f32 %v2282_v57, %v2529_v24 }
 0x3ad   :  { %v251_v4 = vmul.f32 0.0, %v2284_v59 }
 0x40c   :  { %v360_v58 = vpop.permute.xlu1 %359 }
 0x40d   :  { %v362_v60 = vmul.f32 %v2282_v57, %v360_v58  ;;  %v254_v61 = vpop.permute.xlu0 %253 }
 0x40e   :  { %v256_v62 = vmul.f32 %v2284_v59, %v254_v61 }
 0x40f   :  { %364 = vrot.lane.b32.xlu1 %v362_v60, %s2436_s9 }
 0x410   :  { %258 = vrot.lane.b32.xlu0 %v256_v62, %s2436_s9 }
 0x481   :  { %v365_v1 = vpop.permute.xlu1 %364 }
 0x482   :  { %v2610_v7 = vadd.f32 %v365_v1, %v357_v63  ;;  %v259_v9 = vpop.permute.xlu0 %258 }
 0x483   :  { %v2612_v11 = vadd.f32 %v259_v9, %v251_v4 }
 0x484   :  { %2285 = vtanh.f32 %v2610_v7 }
 0x485   :  { %2287 = vtanh.f32 %v2612_v11 }
 0x491   :  { %v2286_v12 = vpop.eup %2285 }
 0x492   :  { %v2288_v13 = vpop.eup %2287  ;;  %370 = vrot.lane.b32.xlu1 %v2286_v12, %s2436_s9 }
 0x493   :  { %264 = vrot.lane.b32.xlu0 %v2288_v13, %s2436_s9 }
 0x504   :  { %v371_v14 = vpop.permute.xlu1 %370 }
 0x505   :  { %v373_v15 = vmul.f32 %v2282_v57, %v371_v14  ;;  %v265_v16 = vpop.permute.xlu0 %264 }
 0x506   :  { %v267_v17 = vmul.f32 %v2284_v59, %v265_v16 }
 0x507   :  { %375 = vrot.lane.b32.xlu0 %v373_v15, %s2437_s12 }
 0x508   :  { %379 = vrot.lane.b32.xlu1 %v267_v17, %s2438_s13 }
 0x50b   :  { %484 = vperm.xlu0 %2263, %v1854_v18  }
 0x579   :  { %v376_v19 = vpop.permute.xlu0 %375 }
 0x57a   :  { %2072 = vmatmul.mubr.msk.f32.vlgmr.msra.gmra.mxu1 %vm62_vm1, %v376_v19  ;;  %v380_v20 = vpop.permute.xlu1 %379 }
 0x57b   :  { %v382_v21 = vsel %vm62_vm1, %v376_v19, %v380_v20  ;;  %2075 = vmatpush3.msra.mxu1 %v2532_v25  ;;  %2090 = vmatprep.mubr.msk.f32.mxu1 %vm2434_vm0, %v2433_v0 }
 0x57c   :  { %2061 = vmatmul.mubr.msk.f32.vlgmr.msra.gmra.mxu0 %vm170_vm2, %v382_v21  ;;  %2076 = vmatprep.subr.mxu1 %v2433_v0 }
 0x57d   :  { %2077 = vmatpush3.msra.mxu1 %v2534_v26  ;;  %2094 = vmatpush3.msra.mxu0 %v2476_v2 }
 0x57e   :  { %2078 = vmatprep.subr.mxu1 %v2433_v0  ;;  %2095 = vmatprep.subr.mxu0 %v2433_v0 }
 0x57f   :  { %2079 = vmatpush3.msra.mxu1 %v2538_v27  ;;  %2096 = vmatpush3.msra.mxu0 %v2481_v3 }
 0x580   :  { %2080 = vmatprep.subr.mxu1 %v2433_v0  ;;  %2097 = vmatprep.subr.mxu0 %v2433_v0 }
 0x581   :  { %2081 = vmatpush3.msra.mxu1 %v2542_v28  ;;  %2098 = vmatpush3.msra.mxu0 %v2491_v5 }
 0x582   :  { %2082 = vmatprep.subr.mxu1 %v2433_v0  ;;  %2099 = vmatprep.subr.mxu0 %v2433_v0 }
 0x583   :  { %2083 = vmatpush3.msra.mxu1 %v2546_v29  ;;  %2100 = vmatpush3.msra.mxu0 %v2498_v6 }
 0x584   :  { %2084 = vmatprep.subr.mxu1 %v2433_v0  ;;  %2101 = vmatprep.mubr.msk.f32.mxu0 %vm2434_vm0, %v2433_v0 }
 0x585   :  { %2085 = vmatpush3.msra.mxu1 %v2550_v30  ;;  %2104 = vmatprep.subr.mxu0 %v2433_v0 }
 0x586   :  { %2086 = vmatprep.subr.mxu1 %v2433_v0  ;;  %v485_v22 = vpop.permute.xlu0 %484 }
 0x587   :  { %2087 = vmatpush3.msra.mxu1 %v2554_v32  ;;  %v487_v23 = vmul.f32 %v2518_v8, %v485_v22 }
 0x588   :  { %2088 = vmatprep.subr.mxu1 %v2433_v0 }
 0x589   :  { %2089 = vmatpush3.msra.mxu1 %v2561_v33  ;;  %v488_v24 = vadd.f32 %v2524_v10, %v487_v23 }
 0x58a   :  { %2123 = vmatprep.subr.mxu1 %v2433_v0 }
 0x63a   :  { %v557_v31 = vpop.f32.mrf.mxu1 }
 0x63b   :  { %v561_v34 = vadd.f32 %v557_v31, %v488_v24 }
 0x63c   :  { %v452_v35 = vpop.f32.mrf.mxu0  ;;  %v2073_v36 = vpop.f32.mrf.mxu1 }
 0x63d   :  { %2289 = vtanh.f32 %v561_v34  ;;  %v453_v37 = vadd.f32 %v2602_v42, %v452_v35  ;;  %v1856_v41 = vmul.f32 -1.442695, %v561_v34 }
 0x63e   :  { %v2062_v38 = vpop.f32.mrf.mxu0 }
 0x63f   :  { %2291 = vtanh.f32 %v453_v37  ;;  %v1853_v43 = vmul.f32 -1.442695, %v453_v37 }
 0x640   :  { %2293 = vpow2.f32 %v1856_v41 }
 0x641   :  { %2295 = vpow2.f32 %v1853_v43 }
 0x64a   :  { %v2290_v39 = vpop.eup %2289 }
 0x64b   :  { %571 = vrot.lane.b32.xlu0 %v2290_v39, %s2436_s9 }
 0x64c   :  { %v2292_v40 = vpop.eup %2291 }
 0x64d   :  { %465 = vrot.lane.b32.xlu1 %v2292_v40, %s2436_s9  ;;  %v2294_v44 = vpop.eup %2293 }
 0x64e   :  { %v2296_v45 = vpop.eup %2295  ;;  %v565_v46 = vadd.f32 1.0, %v2294_v44 }
 0x64f   :  { %v459_v47 = vadd.f32 1.0, %v2296_v45 }
 0x650   :  { %2297 = vrcp.f32 %v565_v46 }
 0x651   :  { %2299 = vrcp.f32 %v459_v47 }
 0x65d   :  { %v2298_v48 = vpop.eup %2297 }
 0x65e   :  { %v2300_v51 = vpop.eup %2299  ;;  %v569_v54 = vmul.f32 %v2298_v48, %v2610_v7  ;;  %v1859_v7 = vld [vmem:[%s2955_s0 + $0x6] sm:$0x3] }
 0x65f   :  { %v463_v57 = vmul.f32 %v2300_v51, %v2612_v11 }
 0x6bd   :  { %v572_v49 = vpop.permute.xlu0 %571 }
 0x6be   :  { %v574_v50 = vmul.f32 %v2298_v48, %v572_v49 }
 0x6bf   :  { %v466_v52 = vpop.permute.xlu1 %465 }
 0x6c0   :  { %576 = vrot.lane.b32.xlu0 %v574_v50, %s2436_s9  ;;  %v468_v53 = vmul.f32 %v2300_v51, %v466_v52 }
 0x6c2   :  { %470 = vrot.lane.b32.xlu1 %v468_v53, %s2436_s9 }
 0x732   :  { %v577_v55 = vpop.permute.xlu0 %576 }
 0x733   :  { %v2662_v56 = vadd.f32 %v577_v55, %v569_v54 }
 0x734   :  { %v471_v58 = vpop.permute.xlu1 %470 }
 0x735   :  { %2301 = vtanh.f32 %v2662_v56  ;;  %v2666_v59 = vadd.f32 %v471_v58, %v463_v57 }
 0x737   :  { %2303 = vtanh.f32 %v2666_v59 }
 0x742   :  { %v2302_v60 = vpop.eup %2301 }
 0x743   :  { %582 = vrot.lane.b32.xlu0 %v2302_v60, %s2436_s9 }
 0x744   :  { %v2304_v61 = vpop.eup %2303 }
 0x745   :  { %476 = vrot.lane.b32.xlu1 %v2304_v61, %s2436_s9 }
 0x7b5   :  { %v583_v62 = vpop.permute.xlu0 %582 }
 0x7b6   :  { %v585_v63 = vmul.f32 %v2298_v48, %v583_v62 }
 0x7b7   :  { %v477_v1 = vpop.permute.xlu1 %476 }
 0x7b8   :  { %587 = vrot.lane.b32.xlu1 %v585_v63, %s2437_s12  ;;  %v479_v4 = vmul.f32 %v2300_v51, %v477_v1 }
 0x7ba   :  { %591 = vrot.lane.b32.xlu0 %v479_v4, %s2438_s13 }
 0x7bc   :  { %696 = vperm.xlu1 %2264, %v1859_v7  }
 0x82a   :  { %v588_v9 = vpop.permute.xlu1 %587 }
 0x82b   :  { %2102 = vmatmul.mubr.msk.f32.vlgmr.msra.gmra.mxu0 %vm62_vm1, %v588_v9 }
 0x82c   :  { %2105 = vmatpush3.msra.mxu0 %v2532_v25  ;;  %2120 = vmatprep.mubr.msk.f32.mxu0 %vm2434_vm0, %v2433_v0  ;;  %v592_v11 = vpop.permute.xlu0 %591 }
 0x82d   :  { %2106 = vmatprep.subr.mxu0 %v2433_v0  ;;  %v594_v12 = vsel %vm62_vm1, %v588_v9, %v592_v11 }
 0x82e   :  { %2107 = vmatpush3.msra.mxu0 %v2534_v26  ;;  %2091 = vmatmul.mubr.msk.f32.vlgmr.msra.gmra.mxu1 %vm170_vm2, %v594_v12 }
 0x82f   :  { %2108 = vmatprep.subr.mxu0 %v2433_v0  ;;  %2124 = vmatpush3.msra.mxu1 %v2476_v2 }
 0x830   :  { %2109 = vmatpush3.msra.mxu0 %v2538_v27  ;;  %2125 = vmatprep.subr.mxu1 %v2433_v0 }
 0x831   :  { %2110 = vmatprep.subr.mxu0 %v2433_v0  ;;  %2126 = vmatpush3.msra.mxu1 %v2481_v3 }
 0x832   :  { %2111 = vmatpush3.msra.mxu0 %v2542_v28  ;;  %2127 = vmatprep.subr.mxu1 %v2433_v0 }
 0x833   :  { %2112 = vmatprep.subr.mxu0 %v2433_v0  ;;  %2128 = vmatpush3.msra.mxu1 %v2491_v5 }
 0x834   :  { %2113 = vmatpush3.msra.mxu0 %v2546_v29  ;;  %2129 = vmatprep.subr.mxu1 %v2433_v0 }
 0x835   :  { %2114 = vmatprep.subr.mxu0 %v2433_v0  ;;  %2130 = vmatpush3.msra.mxu1 %v2498_v6 }
 0x836   :  { %2115 = vmatpush3.msra.mxu0 %v2550_v30  ;;  %2131 = vmatprep.mubr.msk.f32.mxu1 %vm2434_vm0, %v2433_v0 }
 0x837   :  { %2116 = vmatprep.subr.mxu0 %v2433_v0  ;;  %2134 = vmatprep.subr.mxu1 %v2433_v0  ;;  %v697_v13 = vpop.permute.xlu1 %696 }
 0x838   :  { %2117 = vmatpush3.msra.mxu0 %v2554_v32  ;;  %v699_v14 = vmul.f32 %v2518_v8, %v697_v13 }
 0x839   :  { %2118 = vmatprep.subr.mxu0 %v2433_v0 }
 0x83a   :  { %2119 = vmatpush3.msra.mxu0 %v2561_v33  ;;  %v700_v15 = vadd.f32 %v2524_v10, %v699_v14 }
 0x83b   :  { %2153 = vmatprep.subr.mxu0 %v2433_v0 }
 0x8eb   :  { %v769_v16 = vpop.f32.mrf.mxu0 }
 0x8ec   :  { %v773_v17 = vadd.f32 %v769_v16, %v700_v15 }
 0x8ed   :  { %v2103_v18 = vpop.f32.mrf.mxu0 }
 0x8ee   :  { %2305 = vtanh.f32 %v773_v17  ;;  %v664_v19 = vpop.f32.mrf.mxu1  ;;  %v1861_v24 = vmul.f32 -1.442695, %v773_v17 }
 0x8ef   :  { %v665_v20 = vadd.f32 %v2602_v42, %v664_v19 }
 0x8f0   :  { %v2092_v21 = vpop.f32.mrf.mxu1 }
 0x8f1   :  { %2307 = vtanh.f32 %v665_v20  ;;  %v1858_v31 = vmul.f32 -1.442695, %v665_v20 }
 0x8f2   :  { %2309 = vpow2.f32 %v1861_v24 }
 0x8f3   :  { %2311 = vpow2.f32 %v1858_v31 }
 0x8fb   :  { %v2306_v22 = vpop.eup %2305 }
 0x8fc   :  { %783 = vrot.lane.b32.xlu1 %v2306_v22, %s2436_s9 }
 0x8fe   :  { %v2308_v23 = vpop.eup %2307 }
 0x8ff   :  { %677 = vrot.lane.b32.xlu0 %v2308_v23, %s2436_s9  ;;  %v2310_v34 = vpop.eup %2309 }
 0x900   :  { %v777_v35 = vadd.f32 1.0, %v2310_v34  ;;  %v2312_v36 = vpop.eup %2311 }
 0x901   :  { %v671_v37 = vadd.f32 1.0, %v2312_v36 }
 0x902   :  { %2313 = vrcp.f32 %v777_v35 }
 0x903   :  { %2315 = vrcp.f32 %v671_v37 }
 0x90f   :  { %v2314_v38 = vpop.eup %2313 }
 0x910   :  { %v2316_v41 = vpop.eup %2315  ;;  %v781_v45 = vmul.f32 %v2314_v38, %v2662_v56  ;;  %v1864_v56 = vld [vmem:[%s2955_s0 + $0x8] sm:$0x3] }
 0x911   :  { %v675_v48 = vmul.f32 %v2316_v41, %v2666_v59 }
 0x96e   :  { %v784_v39 = vpop.permute.xlu1 %783 }
 0x96f   :  { %v786_v40 = vmul.f32 %v2314_v38, %v784_v39 }
 0x971   :  { %788 = vrot.lane.b32.xlu1 %v786_v40, %s2436_s9  ;;  %v678_v43 = vpop.permute.xlu0 %677 }
 0x972   :  { %v680_v44 = vmul.f32 %v2316_v41, %v678_v43 }
 0x974   :  { %682 = vrot.lane.b32.xlu0 %v680_v44, %s2436_s9 }
 0x9e3   :  { %v789_v46 = vpop.permute.xlu1 %788 }
 0x9e4   :  { %v2715_v47 = vadd.f32 %v789_v46, %v781_v45  ;;  %v1869_v46 = vld [vmem:[%s2955_s0 + $0xa] sm:$0x3] }
 0x9e6   :  { %2317 = vtanh.f32 %v2715_v47  ;;  %v683_v49 = vpop.permute.xlu0 %682 }
 0x9e7   :  { %v2719_v50 = vadd.f32 %v683_v49, %v675_v48 }
 0x9e9   :  { %2319 = vtanh.f32 %v2719_v50 }
 0x9f3   :  { %v2318_v51 = vpop.eup %2317 }
 0x9f4   :  { %794 = vrot.lane.b32.xlu1 %v2318_v51, %s2436_s9 }
 0x9f6   :  { %v2320_v52 = vpop.eup %2319 }
 0x9f7   :  { %688 = vrot.lane.b32.xlu0 %v2320_v52, %s2436_s9 }
 0xa66   :  { %v795_v53 = vpop.permute.xlu1 %794 }
 0xa67   :  { %v797_v54 = vmul.f32 %v2314_v38, %v795_v53 }
 0xa69   :  { %799 = vrot.lane.b32.xlu0 %v797_v54, %s2437_s12  ;;  %v689_v55 = vpop.permute.xlu0 %688 }
 0xa6a   :  { %v691_v57 = vmul.f32 %v2316_v41, %v689_v55 }
 0xa6c   :  { %803 = vrot.lane.b32.xlu1 %v691_v57, %s2438_s13 }
 0xa6d   :  { %908 = vperm.xlu0 %2263, %v1864_v56  }
 0xadb   :  { %v800_v58 = vpop.permute.xlu0 %799 }
 0xadc   :  { %2132 = vmatmul.mubr.msk.f32.vlgmr.msra.gmra.mxu1 %vm62_vm1, %v800_v58 }
 0xadd   :  { %2135 = vmatpush3.msra.mxu1 %v2532_v25  ;;  %2150 = vmatprep.mubr.msk.f32.mxu1 %vm2434_vm0, %v2433_v0 }
 0xade   :  { %2136 = vmatprep.subr.mxu1 %v2433_v0  ;;  %v804_v59 = vpop.permute.xlu1 %803 }
 0xadf   :  { %2137 = vmatpush3.msra.mxu1 %v2534_v26  ;;  %v806_v60 = vsel %vm62_vm1, %v800_v58, %v804_v59 }
 0xae0   :  { %2138 = vmatprep.subr.mxu1 %v2433_v0  ;;  %2121 = vmatmul.mubr.msk.f32.vlgmr.msra.gmra.mxu0 %vm170_vm2, %v806_v60 }
 0xae1   :  { %2139 = vmatpush3.msra.mxu1 %v2538_v27  ;;  %2154 = vmatpush3.msra.mxu0 %v2476_v2 }
 0xae2   :  { %2140 = vmatprep.subr.mxu1 %v2433_v0  ;;  %2155 = vmatprep.subr.mxu0 %v2433_v0 }
 0xae3   :  { %2141 = vmatpush3.msra.mxu1 %v2542_v28  ;;  %2156 = vmatpush3.msra.mxu0 %v2481_v3 }
 0xae4   :  { %2142 = vmatprep.subr.mxu1 %v2433_v0  ;;  %2157 = vmatprep.subr.mxu0 %v2433_v0 }
 0xae5   :  { %2143 = vmatpush3.msra.mxu1 %v2546_v29  ;;  %2158 = vmatpush3.msra.mxu0 %v2491_v5 }
 0xae6   :  { %2144 = vmatprep.subr.mxu1 %v2433_v0  ;;  %2159 = vmatprep.subr.mxu0 %v2433_v0 }
 0xae7   :  { %2161 = vmatprep.mubr.msk.f32.mxu0 %vm2434_vm0, %v2433_v0  ;;  %2160 = vmatpush3.msra.mxu0 %v2498_v6 }
 0xae8   :  { %2145 = vmatpush3.msra.mxu1 %v2550_v30  ;;  %2164 = vmatprep.subr.mxu0 %v2433_v0  ;;  %v909_v61 = vpop.permute.xlu0 %908 }
 0xae9   :  { %2146 = vmatprep.subr.mxu1 %v2433_v0  ;;  %v911_v62 = vmul.f32 %v2518_v8, %v909_v61 }
 0xaea   :  { %2147 = vmatpush3.msra.mxu1 %v2554_v32 }
 0xaeb   :  { %2148 = vmatprep.subr.mxu1 %v2433_v0  ;;  %v912_v63 = vadd.f32 %v2524_v10, %v911_v62 }
 0xaec   :  { %2149 = vmatpush3.msra.mxu1 %v2561_v33 }
 0xaed   :  { %2183 = vmatprep.subr.mxu1 %v2433_v0 }
 0xb9c   :  { %v981_v1 = vpop.f32.mrf.mxu1 }
 0xb9d   :  { %v985_v4 = vadd.f32 %v981_v1, %v912_v63 }
 0xb9e   :  { %v2133_v7 = vpop.f32.mrf.mxu1 }
 0xb9f   :  { %2321 = vtanh.f32 %v985_v4  ;;  %v1866_v15 = vmul.f32 -1.442695, %v985_v4 }
 0xba0   :  { %v876_v9 = vpop.f32.mrf.mxu0 }
 0xba1   :  { %v877_v11 = vadd.f32 %v2602_v42, %v876_v9 }
 0xba2   :  { %v2122_v12 = vpop.f32.mrf.mxu0 }
 0xba3   :  { %2323 = vtanh.f32 %v877_v11  ;;  %v1863_v16 = vmul.f32 -1.442695, %v877_v11 }
 0xba4   :  { %2325 = vpow2.f32 %v1866_v15 }
 0xba5   :  { %2327 = vpow2.f32 %v1863_v16 }
 0xbac   :  { %v2322_v13 = vpop.eup %2321 }
 0xbad   :  { %995 = vrot.lane.b32.xlu0 %v2322_v13, %s2436_s9 }
 0xbb0   :  { %v2324_v14 = vpop.eup %2323 }
 0xbb1   :  { %889 = vrot.lane.b32.xlu1 %v2324_v14, %s2436_s9  ;;  %v2326_v17 = vpop.eup %2325 }
 0xbb2   :  { %v989_v18 = vadd.f32 1.0, %v2326_v17  ;;  %v2328_v19 = vpop.eup %2327 }
 0xbb3   :  { %v883_v20 = vadd.f32 1.0, %v2328_v19 }
 0xbb4   :  { %2329 = vrcp.f32 %v989_v18 }
 0xbb5   :  { %2331 = vrcp.f32 %v883_v20 }
 0xbc1   :  { %v2330_v21 = vpop.eup %2329 }
 0xbc2   :  { %v2332_v24 = vpop.eup %2331  ;;  %v993_v35 = vmul.f32 %v2330_v21, %v2715_v47 }
 0xbc3   :  { %v887_v38 = vmul.f32 %v2332_v24, %v2719_v50 }
 0xc1f   :  { %v996_v22 = vpop.permute.xlu0 %995 }
 0xc20   :  { %v998_v23 = vmul.f32 %v2330_v21, %v996_v22 }
 0xc22   :  { %1000 = vrot.lane.b32.xlu0 %v998_v23, %s2436_s9 }
 0xc23   :  { %v890_v31 = vpop.permute.xlu1 %889 }
 0xc24   :  { %v892_v34 = vmul.f32 %v2332_v24, %v890_v31 }
 0xc26   :  { %894 = vrot.lane.b32.xlu1 %v892_v34, %s2436_s9 }
 0xc94   :  { %v1001_v36 = vpop.permute.xlu0 %1000 }
 0xc95   :  { %v2768_v37 = vadd.f32 %v1001_v36, %v993_v35 }
 0xc97   :  { %2333 = vtanh.f32 %v2768_v37 }
 0xc98   :  { %v895_v39 = vpop.permute.xlu1 %894 }
 0xc99   :  { %v2772_v40 = vadd.f32 %v895_v39, %v887_v38 }
 0xc9b   :  { %2335 = vtanh.f32 %v2772_v40 }
 0xca4   :  { %v2334_v41 = vpop.eup %2333 }
 0xca5   :  { %1006 = vrot.lane.b32.xlu0 %v2334_v41, %s2436_s9 }
 0xca8   :  { %v2336_v43 = vpop.eup %2335 }
 0xca9   :  { %900 = vrot.lane.b32.xlu1 %v2336_v43, %s2436_s9 }
 0xd17   :  { %v1007_v44 = vpop.permute.xlu0 %1006 }
 0xd18   :  { %v1009_v45 = vmul.f32 %v2330_v21, %v1007_v44 }
 0xd1a   :  { %1011 = vrot.lane.b32.xlu1 %v1009_v45, %s2437_s12 }
 0xd1b   :  { %v901_v47 = vpop.permute.xlu1 %900 }
 0xd1c   :  { %v903_v48 = vmul.f32 %v2332_v24, %v901_v47  ;;  %v1874_v24 = vld [vmem:[%s2955_s0 + $0xc] sm:$0x3] }
 0xd1e   :  { %1120 = vperm.xlu1 %2264, %v1869_v46   ;;  %1015 = vrot.lane.b32.xlu0 %v903_v48, %s2438_s13 }
 0xd8c   :  { %v1012_v49 = vpop.permute.xlu1 %1011 }
 0xd8d   :  { %2162 = vmatmul.mubr.msk.f32.vlgmr.msra.gmra.mxu0 %vm62_vm1, %v1012_v49 }
 0xd8e   :  { %2165 = vmatpush3.msra.mxu0 %v2532_v25  ;;  %2180 = vmatprep.mubr.msk.f32.mxu0 %vm2434_vm0, %v2433_v0 }
 0xd8f   :  { %2166 = vmatprep.subr.mxu0 %v2433_v0 }
 0xd90   :  { %2167 = vmatpush3.msra.mxu0 %v2534_v26  ;;  %v1016_v50 = vpop.permute.xlu0 %1015 }
 0xd91   :  { %2168 = vmatprep.subr.mxu0 %v2433_v0  ;;  %v1018_v51 = vsel %vm62_vm1, %v1012_v49, %v1016_v50 }
 0xd92   :  { %2169 = vmatpush3.msra.mxu0 %v2538_v27  ;;  %2151 = vmatmul.mubr.msk.f32.vlgmr.msra.gmra.mxu1 %vm170_vm2, %v1018_v51 }
 0xd93   :  { %2170 = vmatprep.subr.mxu0 %v2433_v0  ;;  %2184 = vmatpush3.msra.mxu1 %v2476_v2 }
 0xd94   :  { %2171 = vmatpush3.msra.mxu0 %v2542_v28  ;;  %2185 = vmatprep.subr.mxu1 %v2433_v0 }
 0xd95   :  { %2172 = vmatprep.subr.mxu0 %v2433_v0  ;;  %2186 = vmatpush3.msra.mxu1 %v2481_v3 }
 0xd96   :  { %2173 = vmatpush3.msra.mxu0 %v2546_v29  ;;  %2187 = vmatprep.subr.mxu1 %v2433_v0 }
 0xd97   :  { %2191 = vmatprep.mubr.msk.f32.mxu1 %vm2434_vm0, %v2433_v0  ;;  %2188 = vmatpush3.msra.mxu1 %v2491_v5 }
 0xd98   :  { %2174 = vmatprep.subr.mxu0 %v2433_v0  ;;  %2189 = vmatprep.subr.mxu1 %v2433_v0 }
 0xd99   :  { %2175 = vmatpush3.msra.mxu0 %v2550_v30  ;;  %2190 = vmatpush3.msra.mxu1 %v2498_v6  ;;  %v1121_v2 = vpop.permute.xlu1 %1120 }
 0xd9a   :  { %2176 = vmatprep.subr.mxu0 %v2433_v0  ;;  %2194 = vmatprep.subr.mxu1 %v2433_v0  ;;  %v1123_v3 = vmul.f32 %v2518_v8, %v1121_v2 }
 0xd9b   :  { %2177 = vmatpush3.msra.mxu0 %v2554_v32 }
 0xd9c   :  { %2178 = vmatprep.subr.mxu0 %v2433_v0  ;;  %v1124_v5 = vadd.f32 %v2524_v10, %v1123_v3 }
 0xd9d   :  { %2179 = vmatpush3.msra.mxu0 %v2561_v33 }
 0xd9e   :  { %2213 = vmatprep.subr.mxu0 %v2433_v0 }
 0xe4d   :  { %v1193_v52 = vpop.f32.mrf.mxu0 }
 0xe4e   :  { %v1197_v53 = vadd.f32 %v1193_v52, %v1124_v5 }
 0xe4f   :  { %v2163_v6 = vpop.f32.mrf.mxu0 }
 0xe50   :  { %2337 = vtanh.f32 %v1197_v53  ;;  %v1871_v59 = vmul.f32 -1.442695, %v1197_v53 }
 0xe52   :  { %v1088_v54 = vpop.f32.mrf.mxu1 }
 0xe53   :  { %v1089_v55 = vadd.f32 %v2602_v42, %v1088_v54 }
 0xe54   :  { %v2152_v56 = vpop.f32.mrf.mxu1 }
 0xe55   :  { %2339 = vtanh.f32 %v1089_v55  ;;  %v1868_v60 = vmul.f32 -1.442695, %v1089_v55 }
 0xe56   :  { %2341 = vpow2.f32 %v1871_v59 }
 0xe57   :  { %2343 = vpow2.f32 %v1868_v60 }
 0xe5d   :  { %v2338_v57 = vpop.eup %2337 }
 0xe5e   :  { %1207 = vrot.lane.b32.xlu1 %v2338_v57, %s2436_s9 }
 0xe62   :  { %v2340_v58 = vpop.eup %2339 }
 0xe63   :  { %1101 = vrot.lane.b32.xlu0 %v2340_v58, %s2436_s9  ;;  %v2342_v61 = vpop.eup %2341 }
 0xe64   :  { %v1201_v62 = vadd.f32 1.0, %v2342_v61  ;;  %v2344_v63 = vpop.eup %2343 }
 0xe65   :  { %v1095_v1 = vadd.f32 1.0, %v2344_v63 }
 0xe66   :  { %2345 = vrcp.f32 %v1201_v62  ;;  %v1879_v62 = vld [vmem:[%s2955_s0 + $0xe] sm:$0x3] }
 0xe67   :  { %2347 = vrcp.f32 %v1095_v1 }
 0xe73   :  { %v2346_v4 = vpop.eup %2345 }
 0xe74   :  { %v2348_v11 = vpop.eup %2347  ;;  %v1205_v14 = vmul.f32 %v2346_v4, %v2768_v37 }
 0xe75   :  { %v1099_v17 = vmul.f32 %v2348_v11, %v2772_v40 }
 0xed0   :  { %v1208_v7 = vpop.permute.xlu1 %1207 }
 0xed1   :  { %v1210_v9 = vmul.f32 %v2346_v4, %v1208_v7  ;;  %v2397_v7 = vld [vmem:[#allocation2 + $0x38] sm:$0xff] }
 0xed3   :  { %1212 = vrot.lane.b32.xlu1 %v1210_v9, %s2436_s9  ;;  %v2398_v9 = vld [vmem:[#allocation2 + $0x30] sm:$0xff] }
 0xed5   :  { %v1102_v12 = vpop.permute.xlu0 %1101 }
 0xed6   :  { %v1104_v13 = vmul.f32 %v2348_v11, %v1102_v12 }
 0xed8   :  { %1106 = vrot.lane.b32.xlu0 %v1104_v13, %s2436_s9 }
 0xf45   :  { %v1213_v15 = vpop.permute.xlu1 %1212 }
 0xf46   :  { %v2821_v16 = vadd.f32 %v1213_v15, %v1205_v14  ;;  %v2400_v14 = vld [vmem:[#allocation2 + $0x20] sm:$0xff]  ;;  %v2401_v15 = vld [vmem:[#allocation2 + $0x18] sm:$0xff] }
 0xf48   :  { %2349 = vtanh.f32 %v2821_v16 }
 0xf4a   :  { %v1107_v18 = vpop.permute.xlu0 %1106 }
 0xf4b   :  { %v2825_v19 = vadd.f32 %v1107_v18, %v1099_v17  ;;  %v2403_v17 = vld [vmem:[#allocation2 + $0x8] sm:$0xff]  ;;  %v2404_v18 = vld [vmem:[#allocation2] sm:$0xff] }
 0xf4d   :  { %2351 = vtanh.f32 %v2825_v19 }
 0xf55   :  { %v2350_v20 = vpop.eup %2349 }
 0xf56   :  { %1218 = vrot.lane.b32.xlu1 %v2350_v20, %s2436_s9  ;;  %v2405_v20 = vld [vmem:[%s2956_s1 + $0x20] ss:$0 sm:$0xff] }
 0xf5a   :  { %v2352_v21 = vpop.eup %2351 }
 0xf5b   :  { %1112 = vrot.lane.b32.xlu0 %v2352_v21, %s2436_s9 }
 0xfc8   :  { %v1219_v22 = vpop.permute.xlu1 %1218 }
 0xfc9   :  { %v1221_v23 = vmul.f32 %v2346_v4, %v1219_v22  ;;  %v2406_v22 = vld [vmem:[%s2956_s1 + $0x21] ss:$0 sm:$0xff] }
 0xfcb   :  { %1223 = vrot.lane.b32.xlu0 %v1221_v23, %s2437_s12 }
 0xfcd   :  { %v1113_v31 = vpop.permute.xlu0 %1112 }
 0xfce   :  { %v1115_v34 = vmul.f32 %v2348_v11, %v1113_v31  ;;  %v2399_v11 = vld [vmem:[#allocation2 + $0x28] sm:$0xff] }
 0xfcf   :  { %1332 = vperm.xlu0 %2263, %v1874_v24  }
 0xfd0   :  { %1227 = vrot.lane.b32.xlu1 %v1115_v34, %s2438_s13 }
0x103d   :  { %v1224_v35 = vpop.permute.xlu0 %1223 }
0x103e   :  { %2192 = vmatmul.mubr.msk.f32.vlgmr.msra.gmra.mxu1 %vm62_vm1, %v1224_v35 }
0x103f   :  { %2195 = vmatpush3.msra.mxu1 %v2532_v25  ;;  %2210 = vmatprep.mubr.msk.f32.mxu1 %vm2434_vm0, %v2433_v0  ;;  %v2393_v25 = vld [vmem:[%s2956_s1 + $0x18] sm:$0xff] }
0x1040   :  { %2196 = vmatprep.subr.mxu1 %v2433_v0 }
0x1041   :  { %2197 = vmatpush3.msra.mxu1 %v2534_v26  ;;  %v2394_v26 = vld [vmem:[%s2956_s1 + $0x10] sm:$0xff] }
0x1042   :  { %2198 = vmatprep.subr.mxu1 %v2433_v0  ;;  %v1228_v36 = vpop.permute.xlu1 %1227 }
0x1043   :  { %2199 = vmatpush3.msra.mxu1 %v2538_v27  ;;  %v1230_v37 = vsel %vm62_vm1, %v1224_v35, %v1228_v36  ;;  %v2395_v27 = vld [vmem:[%s2956_s1 + $0x8] sm:$0xff] }
0x1044   :  { %2200 = vmatprep.subr.mxu1 %v2433_v0  ;;  %2181 = vmatmul.mubr.msk.f32.vlgmr.msra.gmra.mxu0 %vm170_vm2, %v1230_v37 }
0x1045   :  { %2201 = vmatpush3.msra.mxu1 %v2542_v28  ;;  %2214 = vmatpush3.msra.mxu0 %v2393_v25  ;;  %v2396_v28 = vld [vmem:[%s2956_s1] sm:$0xff] }
0x1046   :  { %2202 = vmatprep.subr.mxu1 %v2433_v0  ;;  %2215 = vmatprep.subr.mxu0 %v2433_v0 }
0x1047   :  { %2221 = vmatprep.mubr.msk.f32.mxu0 %vm2434_vm0, %v2433_v0  ;;  %2216 = vmatpush3.msra.mxu0 %v2394_v26 }
0x1048   :  { %2203 = vmatpush3.msra.mxu1 %v2546_v29  ;;  %2217 = vmatprep.subr.mxu0 %v2433_v0 }
0x1049   :  { %2204 = vmatprep.subr.mxu1 %v2433_v0  ;;  %2218 = vmatpush3.msra.mxu0 %v2395_v27 }
0x104a   :  { %2205 = vmatpush3.msra.mxu1 %v2550_v30  ;;  %2219 = vmatprep.subr.mxu0 %v2433_v0  ;;  %v1333_v29 = vpop.permute.xlu0 %1332 }
0x104b   :  { %2206 = vmatprep.subr.mxu1 %v2433_v0  ;;  %2220 = vmatpush3.msra.mxu0 %v2396_v28  ;;  %v1335_v30 = vmul.f32 %v2518_v8, %v1333_v29 }
0x104c   :  { %2207 = vmatpush3.msra.mxu1 %v2554_v32  ;;  %2224 = vmatprep.subr.mxu0 %v2433_v0 }
0x104d   :  { %2208 = vmatprep.subr.mxu1 %v2433_v0  ;;  %v1336_v38 = vadd.f32 %v2524_v10, %v1335_v30 }
0x104e   :  { %2209 = vmatpush3.msra.mxu1 %v2561_v33 }
0x104f   :  { %2243 = vmatprep.subr.mxu1 %v2433_v0 }
0x10fe   :  { %v1405_v39 = vpop.f32.mrf.mxu1 }
0x10ff   :  { %v1409_v40 = vadd.f32 %v1405_v39, %v1336_v38 }
0x1100   :  { %v2193_v41 = vpop.f32.mrf.mxu1 }
0x1101   :  { %2353 = vtanh.f32 %v1409_v40  ;;  %v1876_v46 = vmul.f32 -1.442695, %v1409_v40 }
0x1104   :  { %v1300_v43 = vpop.f32.mrf.mxu0 }
0x1105   :  { %v1301_v32 = vadd.f32 %v2602_v42, %v1300_v43 }
0x1106   :  { %v2182_v44 = vpop.f32.mrf.mxu0 }
0x1107   :  { %2355 = vtanh.f32 %v1301_v32  ;;  %v1873_v8 = vmul.f32 -1.442695, %v1301_v32 }
0x1108   :  { %2357 = vpow2.f32 %v1876_v46 }
0x1109   :  { %2359 = vpow2.f32 %v1873_v8 }
0x110e   :  { %v2354_v45 = vpop.eup %2353 }
0x110f   :  { %1419 = vrot.lane.b32.xlu0 %v2354_v45, %s2436_s9 }
0x1114   :  { %v2356_v33 = vpop.eup %2355 }
0x1115   :  { %1313 = vrot.lane.b32.xlu1 %v2356_v33, %s2436_s9  ;;  %v2358_v10 = vpop.eup %2357 }
0x1116   :  { %v1413_v47 = vadd.f32 1.0, %v2358_v10  ;;  %v2360_v48 = vpop.eup %2359 }
0x1117   :  { %v1307_v49 = vadd.f32 1.0, %v2360_v48 }
0x1118   :  { %2361 = vrcp.f32 %v1413_v47 }
0x1119   :  { %2363 = vrcp.f32 %v1307_v49 }
0x1125   :  { %v2362_v50 = vpop.eup %2361 }
0x1126   :  { %v2364_v3 = vpop.eup %2363  ;;  %v1417_v53 = vmul.f32 %v2362_v50, %v2821_v16  ;;  %v2402_v16 = vld [vmem:[#allocation2 + $0x10] sm:$0xff] }
0x1127   :  { %v1311_v55 = vmul.f32 %v2364_v3, %v2825_v19 }
0x1181   :  { %v1420_v51 = vpop.permute.xlu0 %1419 }
0x1182   :  { %v1422_v2 = vmul.f32 %v2362_v50, %v1420_v51 }
0x1184   :  { %1424 = vrot.lane.b32.xlu0 %v1422_v2, %s2436_s9 }
0x1187   :  { %v1314_v5 = vpop.permute.xlu1 %1313 }
0x1188   :  { %v1316_v52 = vmul.f32 %v2364_v3, %v1314_v5 }
0x118a   :  { %1318 = vrot.lane.b32.xlu1 %v1316_v52, %s2436_s9 }
0x11f6   :  { %v1425_v6 = vpop.permute.xlu0 %1424 }
0x11f7   :  { %v2882_v54 = vadd.f32 %v1425_v6, %v1417_v53 }
0x11f9   :  { %2365 = vtanh.f32 %v2882_v54 }
0x11fc   :  { %v1319_v56 = vpop.permute.xlu1 %1318 }
0x11fd   :  { %v2886_v57 = vadd.f32 %v1319_v56, %v1311_v55 }
0x11ff   :  { %2367 = vtanh.f32 %v2886_v57 }
0x1206   :  { %v2366_v58 = vpop.eup %2365 }
0x1207   :  { %1430 = vrot.lane.b32.xlu0 %v2366_v58, %s2436_s9 }
0x120c   :  { %v2368_v59 = vpop.eup %2367 }
0x120d   :  { %1324 = vrot.lane.b32.xlu1 %v2368_v59, %s2436_s9 }
0x1279   :  { %v1431_v60 = vpop.permute.xlu0 %1430 }
0x127a   :  { %v1433_v61 = vmul.f32 %v2362_v50, %v1431_v60 }
0x127c   :  { %1435 = vrot.lane.b32.xlu1 %v1433_v61, %s2437_s12 }
0x127f   :  { %v1325_v63 = vpop.permute.xlu1 %1324 }
0x1280   :  { %1544 = vperm.xlu1 %2264, %v1879_v62   ;;  %v1327_v1 = vmul.f32 %v2364_v3, %v1325_v63 }
0x1282   :  { %1439 = vrot.lane.b32.xlu0 %v1327_v1, %s2438_s13 }
0x12ee   :  { %v1436_v4 = vpop.permute.xlu1 %1435 }
0x12ef   :  { %2222 = vmatmul.mubr.msk.f32.vlgmr.msra.gmra.mxu0 %vm62_vm1, %v1436_v4 }
0x12f0   :  { %2225 = vmatpush3.msra.mxu0 %v2397_v7  ;;  %2240 = vmatprep.mubr.msk.f32.mxu0 %vm2434_vm0, %v2433_v0 }
0x12f1   :  { %2226 = vmatprep.subr.mxu0 %v2433_v0 }
0x12f2   :  { %2227 = vmatpush3.msra.mxu0 %v2398_v9  ;;  %v1755_v9 = vld [vmem:[%s2958_s3 + $0x18] sm:$0xff] }
0x12f3   :  { %2228 = vmatprep.subr.mxu0 %v2433_v0 }
0x12f4   :  { %2229 = vmatpush3.msra.mxu0 %v2399_v11  ;;  %v1440_v12 = vpop.permute.xlu0 %1439  ;;  %v1754_v11 = vld [vmem:[%s2958_s3 + $0x10] sm:$0xff] }
0x12f5   :  { %2230 = vmatprep.subr.mxu0 %v2433_v0  ;;  %v1442_v13 = vsel %vm62_vm1, %v1436_v4, %v1440_v12  ;;  %v1753_v12 = vld [vmem:[%s2958_s3 + $0x8] sm:$0xff] }
0x12f6   :  { %2231 = vmatpush3.msra.mxu0 %v2400_v14  ;;  %2211 = vmatmul.mubr.msk.f32.vlgmr.msra.gmra.mxu1 %vm170_vm2, %v1442_v13  ;;  %v1752_v13 = vld [vmem:[%s2958_s3] sm:$0xff] }
0x12f7   :  { %2232 = vmatprep.subr.mxu0 %v2433_v0  ;;  %2251 = vmatprep.mubr.msk.f32.mxu1 %vm2434_vm0, %v2433_v0 }
0x12f8   :  { %2233 = vmatpush3.msra.mxu0 %v2401_v15  ;;  %2244 = vmatpush3.msra.mxu1 %v1755_v9 }
0x12f9   :  { %2234 = vmatprep.subr.mxu0 %v2433_v0  ;;  %2245 = vmatprep.subr.mxu1 %v2433_v0 }
0x12fa   :  { %2235 = vmatpush3.msra.mxu0 %v2402_v16  ;;  %2246 = vmatpush3.msra.mxu1 %v1754_v11 }
0x12fb   :  { %2236 = vmatprep.subr.mxu0 %v2433_v0  ;;  %v1545_v19 = vpop.permute.xlu1 %1544  ;;  %2247 = vmatprep.subr.mxu1 %v2433_v0 }
0x12fc   :  { %2237 = vmatpush3.msra.mxu0 %v2403_v17  ;;  %v1547_v21 = vmul.f32 %v2405_v20, %v1545_v19  ;;  %2248 = vmatpush3.msra.mxu1 %v1753_v12 }
0x12fd   :  { %2238 = vmatprep.subr.mxu0 %v2433_v0  ;;  %2249 = vmatprep.subr.mxu1 %v2433_v0 }
0x12fe   :  { %2239 = vmatpush3.msra.mxu0 %v2404_v18  ;;  %v1548_v23 = vadd.f32 %v2406_v22, %v1547_v21  ;;  %2250 = vmatpush3.msra.mxu1 %v1752_v13  ;;  %v1884_v18 = vld [vmem:[%s2958_s3 + $0x20] ss:$0 sm:$0xff] }
0x13af   :  { %v1617_v24 = vpop.f32.mrf.mxu0 }
0x13b0   :  { %v1621_v31 = vadd.f32 %v1617_v24, %v1548_v23 }
0x13b1   :  { %v2223_v34 = vpop.f32.mrf.mxu0 }
0x13b2   :  { %2369 = vtanh.f32 %v1621_v31  ;;  %v1881_v27 = vmul.f32 -1.442695, %v1621_v31 }
0x13b6   :  { %v1512_v35 = vpop.f32.mrf.mxu1 }
0x13b7   :  { %v1513_v36 = vadd.f32 %v2602_v42, %v1512_v35 }
0x13b8   :  { %v2212_v37 = vpop.f32.mrf.mxu1 }
0x13b9   :  { %2371 = vtanh.f32 %v1513_v36  ;;  %v1878_v28 = vmul.f32 -1.442695, %v1513_v36 }
0x13ba   :  { %2373 = vpow2.f32 %v1881_v27 }
0x13bb   :  { %2375 = vpow2.f32 %v1878_v28 }
0x13bf   :  { %v2370_v25 = vpop.eup %2369 }
0x13c0   :  { %1631 = vrot.lane.b32.xlu1 %v2370_v25, %s2436_s9 }
0x13c6   :  { %v2372_v26 = vpop.eup %2371 }
0x13c7   :  { %1525 = vrot.lane.b32.xlu0 %v2372_v26, %s2436_s9  ;;  %v2374_v29 = vpop.eup %2373 }
0x13c8   :  { %v1625_v30 = vadd.f32 1.0, %v2374_v29  ;;  %v2376_v38 = vpop.eup %2375 }
0x13c9   :  { %v1519_v39 = vadd.f32 1.0, %v2376_v38 }
0x13ca   :  { %2377 = vrcp.f32 %v1625_v30 }
0x13cb   :  { %2379 = vrcp.f32 %v1519_v39 }
0x13d7   :  { %v2378_v40 = vpop.eup %2377 }
0x13d8   :  { %v2380_v43 = vpop.eup %2379  ;;  %v1629_v45 = vmul.f32 %v2378_v40, %v2882_v54  ;;  %v2407_v54 = vld [vmem:[#allocation2 + $0x40] ss:$0 sm:$0xff] }
0x13d9   :  { %v1523_v8 = vmul.f32 %v2380_v43, %v2886_v57 }
0x1432   :  { %v1632_v42 = vpop.permute.xlu1 %1631 }
0x1433   :  { %v1634_v41 = vmul.f32 %v2378_v40, %v1632_v42 }
0x1435   :  { %1636 = vrot.lane.b32.xlu1 %v1634_v41, %s2436_s9 }
0x1439   :  { %v1526_v32 = vpop.permute.xlu0 %1525 }
0x143a   :  { %v1528_v44 = vmul.f32 %v2380_v43, %v1526_v32 }
0x143c   :  { %1530 = vrot.lane.b32.xlu0 %v1528_v44, %s2436_s9 }
0x14a7   :  { %v1637_v33 = vpop.permute.xlu1 %1636 }
0x14a8   :  { %v1639_v46 = vadd.f32 %v1637_v33, %v1629_v45 }
0x14aa   :  { %2381 = vtanh.f32 %v1639_v46 }
0x14ae   :  { %v1531_v10 = vpop.permute.xlu0 %1530 }
0x14af   :  { %v1533_v47 = vadd.f32 %v1531_v10, %v1523_v8 }
0x14b1   :  { %2383 = vtanh.f32 %v1533_v47 }
0x14b7   :  { %v2382_v48 = vpop.eup %2381 }
0x14b8   :  { %1642 = vrot.lane.b32.xlu1 %v2382_v48, %s2436_s9 }
0x14be   :  { %v2384_v49 = vpop.eup %2383 }
0x14bf   :  { %1536 = vrot.lane.b32.xlu0 %v2384_v49, %s2436_s9 }
0x152a   :  { %v1643_v50 = vpop.permute.xlu1 %1642 }
0x152b   :  { %v1645_v51 = vmul.f32 %v2378_v40, %v1643_v50 }
0x152d   :  { %1647 = vrot.lane.b32.xlu0 %v1645_v51, %s2437_s12 }
0x1531   :  { %v1537_v2 = vpop.permute.xlu0 %1536 }
0x1532   :  { %v1539_v3 = vmul.f32 %v2380_v43, %v1537_v2 }
0x1534   :  { %1651 = vrot.lane.b32.xlu1 %v1539_v3, %s2438_s13 }
0x159f   :  { %v1648_v5 = vpop.permute.xlu0 %1647 }
0x15a6   :  { %v1652_v52 = vpop.permute.xlu1 %1651 }
0x15a7   :  { %v1654_v53 = vsel %vm62_vm1, %v1648_v5, %v1652_v52 }
0x15a8   :  { %2241 = vmatmul.mubr.msk.f32.vlgmr.msra.gmra.mxu0 %vm170_vm2, %v1654_v53 }
0x1668   :  { %v1724_v6 = vpop.f32.mrf.mxu0 }
0x1669   :  { %v1725_v55 = vadd.f32 %v2407_v54, %v1724_v6 }
0x166a   :  { %v2242_v56 = vpop.f32.mrf.mxu0 }
0x166b   :  { %2385 = vtanh.f32 %v1725_v55  ;;  %v1883_v58 = vmul.f32 -1.442695, %v1725_v55 }
0x166d   :  { %2387 = vpow2.f32 %v1883_v58 }
0x1678   :  { %v2386_v57 = vpop.eup %2385 }
0x1679   :  { %1737 = vrot.lane.b32.xlu0 %v2386_v57, %s2436_s9 }
0x167a   :  { %v2388_v59 = vpop.eup %2387 }
0x167b   :  { %v1731_v60 = vadd.f32 1.0, %v2388_v59 }
0x167d   :  { %2389 = vrcp.f32 %v1731_v60 }
0x168a   :  { %v2390_v61 = vpop.eup %2389 }
0x168b   :  { %v1735_v1 = vmul.f32 %v2390_v61, %v1533_v47 }
0x16eb   :  { %v1738_v62 = vpop.permute.xlu0 %1737 }
0x16ec   :  { %v1740_v63 = vmul.f32 %v2390_v61, %v1738_v62 }
0x16ee   :  { %1742 = vrot.lane.b32.xlu1 %v1740_v63, %s2436_s9 }
0x1760   :  { %v1743_v4 = vpop.permute.xlu1 %1742 }
0x1761   :  { %v1745_v7 = vadd.f32 %v1743_v4, %v1735_v1 }
0x1763   :  { %2391 = vtanh.f32 %v1745_v7 }
0x1770   :  { %v2392_v14 = vpop.eup %2391 }
0x1771   :  { %1748 = vrot.lane.b32.xlu0 %v2392_v14, %s2436_s9 }
0x17e3   :  { %v1749_v15 = vpop.permute.xlu0 %1748 }
0x17e4   :  { %v1751_v16 = vmul.f32 %v2390_v61, %v1749_v15 }
0x17e6   :  { %1762 = vrot.lane.b32.xlu1 %v1751_v16, %s2437_s12 }
0x1858   :  { %v1763_v17 = vpop.permute.xlu1 %1762 }
0x1859   :  { %2252 = vmatmul.mubr.msk.f32.vlgmr.msra.gmra.mxu1 %vm62_vm1, %v1763_v17 }
0x1919   :  { %v1832_v19 = vpop.f32.mrf.mxu1 }
0x191a   :  { %v1833_v20 = vadd.f32 %v1884_v18, %v1832_v19 }
0x191b   :  { %v2253_v21 = vpop.f32.mrf.mxu1 }
0x191c   :  { %1837 = vst.msk [vmem:[%s2959_s4] sm:$0x3] %vm1836_vm3, %v1833_v20 }
0x191d   :  { %1842 = vsyncpa [#allocation3], 1 }

</bundles_post_ra>
